<compile_context>
chip_gen: v5e
topology: v5e:2x2
jax: 0.10.0
libtpu: 0.0.40
codegen_flags: <defaults>
</compile_context>

<pallas_src>
import functools

import jax
import jax.numpy as jnp
from jax.experimental import pallas as pl
from jax.experimental.pallas import tpu as pltpu

F32 = jnp.float32
BF16 = jnp.bfloat16
NEG_BIG = -1e30  # "-inf" for masked (padded) key positions


# ----------------------------------------------------------------------------
# Fused attention kernel
# ----------------------------------------------------------------------------
def _attn_kernel(xq_ref, xkv_ref, wq_ref, wk_ref, wv_ref,
                 bq_ref, bv_ref, g_ref, o_ref,
                 q_sc, m_sc, acc_sc, k_cache, v_cache,
                 *, c, n_valid):
    """One (batch, q-tile, kv-tile) grid step.

    xq_ref : (C, tq)    query-side slab of x, f32 (resident across the kv axis)
    xkv_ref: (C, tk)    key/value-side slab of x, f32 (only read when qi == 0)
    wq/wk  : (C8, C)    1x1-conv weights, bf16;   wv: (C, C) bf16
    bq     : (C8, 1)    f32;  bv: (C, 1) f32   (key bias dropped: cancels)
    g_ref  : (1, 1)     gamma scalar (SMEM)
    o_ref  : (C, tq)    output slab, f32
    q_sc   : (C8, tq)   bf16 projected-query scratch
    m_sc   : (1, tq)    f32 running row max
    acc_sc : (C+1, tq)  f32 accumulator; row C carries the softmax denominator
    k_cache: (nk, C8, tk)  bf16 per-batch key cache
    v_cache: (nk, C+1, tk) bf16 per-batch value cache (+ all-ones row)
    """
    qi = pl.program_id(1)
    ki = pl.program_id(2)
    tk = k_cache.shape[2]

    # ---- fill the per-batch K/V cache during the first q-tile's kv sweep ----
    @pl.when(qi == 0)
    def _fill_kv():
        xkv = xkv_ref[...].astype(BF16)                                 # (C, tk)
        k = jnp.dot(wk_ref[...], xkv, preferred_element_type=F32)       # (C8, tk)  no bk: cancels in softmax
        v = jnp.dot(wv_ref[...], xkv, preferred_element_type=F32)       # (C , tk)  bv deferred to finalize
        ones = jnp.ones((1, tk), F32)                                    # extra row -> denominator via MXU
        k_cache[ki] = k.astype(BF16)
        v_cache[ki] = jnp.concatenate([v, ones], axis=0).astype(BF16)   # (C+1, tk)

    # ---- per q-tile init (project query once; it stays resident in VMEM) ----
    @pl.when(ki == 0)
    def _init():
        q = jnp.dot(wq_ref[...], xq_ref[...].astype(BF16),
                    preferred_element_type=F32) + bq_ref[...]            # (C8, tq)
        q_sc[...] = q.astype(BF16)
        m_sc[...] = jnp.full(m_sc.shape, -jnp.inf, dtype=F32)
        acc_sc[...] = jnp.zeros(acc_sc.shape, dtype=F32)

    k = k_cache[ki]                                                      # (C8,  tk) bf16
    v = v_cache[ki]                                                      # (C+1, tk) bf16

    # s_t[j, i] = sum_d k[d, j] * q[d, i]  -> (tk, tq); keeps tq in the lane dim
    s_t = jax.lax.dot_general(k, q_sc[...], (((0,), (0,)), ((), ())),
                              preferred_element_type=F32)
    if n_valid is not None:
        # mask padded key positions (padding < 128 <= tk, so only the last tile)
        row = jax.lax.broadcasted_iota(jnp.int32, s_t.shape, 0) + ki * tk
        s_t = jnp.where(row < n_valid, s_t, NEG_BIG)

    # ---- online softmax update ----
    m_prev = m_sc[...]                                                   # (1, tq)
    m_new = jnp.maximum(m_prev, jnp.max(s_t, axis=0, keepdims=True))     # (1, tq)
    alpha = jnp.exp(m_prev - m_new)                                      # (1, tq)
    # TODO(synk): compute exp in bf16 on v6e/v7x (bf16-capable EUP); f32 kept so
    # the same kernel is also optimal on v5e.
    p = jnp.exp(s_t - m_new).astype(BF16)                                # (tk, tq)
    acc_sc[...] = alpha * acc_sc[...] + jnp.dot(v, p,
                                                preferred_element_type=F32)
    m_sc[...] = m_new

    @pl.when(ki == pl.num_programs(2) - 1)
    def _finalize():
        acc = acc_sc[...]                                                # (C+1, tq)
        inv_l = pl.reciprocal(acc[c:c + 1, :], approx=True)              # row C == sum_j p
        out = acc[:c, :] * inv_l + bv_ref[...]                           # value bias applied once
        o_ref[...] = (g_ref[0, 0] * out + xq_ref[...]).astype(o_ref.dtype)


def _pick_tile(n_pad, cap):
    """Largest 128-multiple divisor of n_pad that is <= cap (n_pad % 128 == 0)."""
    cap = max(128, (cap // 128) * 128)
    if n_pad <= cap:
        return n_pad
    t = cap
    while t >= 128:
        if n_pad % t == 0:
            return t
        t -= 128
    return 128


def attention_block(x_nchw, params, *, q_tile_cap=512, kv_tile_cap=512):
    """x_nchw: (B, C, H, W) f32 -> (B, C, H, W), matching AttentionBlock.forward."""
    b, c, h, w = x_nchw.shape
    c8 = params["wq"].shape[0]
    n = h * w
    n_pad = max(128, ((n + 127) // 128) * 128)

    x = x_nchw.reshape(b, c, n).astype(F32)       # free row-major reshape, no transpose
    if n_pad != n:
        x = jnp.pad(x, ((0, 0), (0, 0), (0, n_pad - n)))

    tq = _pick_tile(n_pad, q_tile_cap)
    tk = _pick_tile(n_pad, kv_tile_cap)
    nq = n_pad // tq
    nk = n_pad // tk

    # weights in bf16 (MXU-native); biases / gamma stay f32.
    wq = params["wq"].astype(BF16)
    wk = params["wk"].astype(BF16)
    wv = params["wv"].astype(BF16)
    bq = params["bq"].reshape(c8, 1).astype(F32)
    bv = params["bv"].reshape(c, 1).astype(F32)
    gamma = params["gamma"].reshape(1, 1).astype(F32)

    kernel = functools.partial(_attn_kernel, c=c,
                               n_valid=(n if n_pad != n else None))

    # xkv: fetch block ki while qi == 0 (cache fill); afterwards pin to the last
    # block already in VMEM so Pallas skips the redundant HBM re-reads.
    def xkv_map(bi, qi, ki):
        return (bi, 0, jnp.where(qi == 0, ki, nk - 1))

    out = pl.pallas_call(
        kernel,
        out_shape=jax.ShapeDtypeStruct((b, c, n_pad), F32),
        grid=(b, nq, nk),
        in_specs=[
            pl.BlockSpec((None, c, tq), lambda bi, qi, ki: (bi, 0, qi)),   # x (query side)
            pl.BlockSpec((None, c, tk), xkv_map),                          # x (key/value side)
            pl.BlockSpec((c8, c), lambda bi, qi, ki: (0, 0)),              # wq (bf16)
            pl.BlockSpec((c8, c), lambda bi, qi, ki: (0, 0)),              # wk (bf16)
            pl.BlockSpec((c, c), lambda bi, qi, ki: (0, 0)),               # wv (bf16)
            pl.BlockSpec((c8, 1), lambda bi, qi, ki: (0, 0)),              # bq
            pl.BlockSpec((c, 1), lambda bi, qi, ki: (0, 0)),               # bv
            pl.BlockSpec(memory_space=pltpu.MemorySpace.SMEM),             # gamma (1,1)
        ],
        out_specs=pl.BlockSpec((None, c, tq), lambda bi, qi, ki: (bi, 0, qi)),
        scratch_shapes=[
            pltpu.VMEM((c8, tq), BF16),          # projected query tile
            pltpu.VMEM((1, tq), F32),            # running row-max
            pltpu.VMEM((c + 1, tq), F32),        # accumulator (+denominator row)
            pltpu.VMEM((nk, c8, tk), BF16),      # per-batch K cache
            pltpu.VMEM((nk, c + 1, tk), BF16),   # per-batch V cache (+ones row)
        ],
        compiler_params=pltpu.CompilerParams(
            # batch is megacore-parallel; q must stay sequential per core so the
            # qi==0 K/V-cache fill happens before it is consumed; kv is the
            # innermost reduction axis for the online softmax.
            dimension_semantics=("parallel", "arbitrary", "arbitrary"),
            vmem_limit_bytes=48 * 1024 * 1024),
    )(x, x, wq, wk, wv, bq, bv, gamma)

    if n_pad != n:
        out = out[:, :, :n]
    return out.reshape(b, c, h, w)


# ----------------------------------------------------------------------------
# Deterministic parameter initialization (shapes from the PyTorch __init__)
# ----------------------------------------------------------------------------
def init_attention_params(key, in_channels):
    c8 = in_channels // 8
    k1, k2, k3, k4, k5, k6 = jax.random.split(key, 6)
    s = (1.0 / in_channels) ** 0.5
    return {
        "wq": jax.random.normal(k1, (c8, in_channels), F32) * s,
        "bq": jax.random.normal(k2, (c8,), F32) * 0.01,
        "wk": jax.random.normal(k3, (c8, in_channels), F32) * s,
        "bk": jax.random.normal(k4, (c8,), F32) * 0.01,   # kept for API compat; cancels in softmax
        "wv": jax.random.normal(k5, (in_channels, in_channels), F32) * s,
        "bv": jax.random.normal(k6, (in_channels,), F32) * 0.01,
        "gamma": jnp.zeros((1,), F32),     # PyTorch: nn.Parameter(torch.zeros(1))
    }


# ----------------------------------------------------------------------------
# Pure-JAX f32 reference of the PyTorch forward (includes the key bias, which
# the kernel drops because it cancels exactly in the softmax)
# ----------------------------------------------------------------------------
def attention_ref(x_nchw, params):
    b, c, h, w = x_nchw.shape
    n = h * w
    xf = x_nchw.reshape(b, c, n).astype(F32)
    q = jnp.einsum("oc,bcn->bon", params["wq"], xf) + params["bq"][None, :, None]
    k = jnp.einsum("oc,bcn->bon", params["wk"], xf) + params["bk"][None, :, None]
    v = jnp.einsum("oc,bcn->bon", params["wv"], xf) + params["bv"][None, :, None]
    energy = jnp.einsum("bdi,bdj->bij", q, k)
    attn = jax.nn.softmax(energy, axis=-1)
    out = jnp.einsum("bcj,bij->bci", v, attn)
    out = params["gamma"][0] * out + xf
    return out.reshape(b, c, h, w)


if __name__ == "__main__":
    key = jax.random.PRNGKey(0)
    kp, kx, kx2 = jax.random.split(key, 3)

    batch, channels, height, width = 2, 32, 16, 16
    params = init_attention_params(kp, channels)
    # gamma is zero at PyTorch init (output == x exactly); use a non-zero value
    # so the attention path is actually exercised by the checks below.
    params = dict(params, gamma=jnp.full((1,), 0.5, F32))

    x = jax.random.normal(kx, (batch, channels, height, width), F32)

    # 1) single-tile path (N = 256 <= caps)
    fwd = jax.jit(attention_block)
    y = fwd(x, params)
    jax.block_until_ready(y)
    assert y.shape == (batch, channels, height, width)
    assert bool(jnp.all(jnp.isfinite(y)))
    y_ref = attention_ref(x, params)
    err = float(jnp.max(jnp.abs(y - y_ref)))
    assert err < 5e-2, f"max abs error {err}"   # bf16 MXU path vs f32 reference

    # 2) multi-tile path (online softmax across kv tiles + K/V cache reuse)
    fwd_tiled = jax.jit(functools.partial(attention_block,
                                          q_tile_cap=128, kv_tile_cap=128))
    y_tiled = fwd_tiled(x, params)
    jax.block_until_ready(y_tiled)
    err2 = float(jnp.max(jnp.abs(y_tiled - y_ref)))
    assert err2 < 5e-2, f"max abs error (tiled) {err2}"

    # 3) non-128-divisible spatial size (N = 100 padded to 128 + masked keys)
    x_odd = jax.random.normal(kx2, (batch, channels, 10, 10), F32)
    y_odd = jax.jit(attention_block)(x_odd, params)
    jax.block_until_ready(y_odd)
    err3 = float(jnp.max(jnp.abs(y_odd - attention_ref(x_odd, params))))
    assert err3 < 5e-2, f"max abs error (padded) {err3}"

    print("KERNEL_OK")
</pallas_src>

<mosaic_0001>
module attributes {stable_mosaic.version = 11 : i64} {
  func.func @_attn_kernel(%arg0: i32, %arg1: i32, %arg2: i32, %arg3: memref<1x32x256xf32, #tpu.memory_space<vmem>>, %arg4: memref<1x32x256xf32, #tpu.memory_space<vmem>>, %arg5: memref<4x32xbf16, #tpu.memory_space<vmem>>, %arg6: memref<4x32xbf16, #tpu.memory_space<vmem>>, %arg7: memref<32x32xbf16, #tpu.memory_space<vmem>>, %arg8: memref<4x1xf32, #tpu.memory_space<vmem>>, %arg9: memref<32x1xf32, #tpu.memory_space<vmem>>, %arg10: memref<1x1xf32, #tpu.memory_space<smem>>, %arg11: memref<1x32x256xf32, #tpu.memory_space<vmem>>, %arg12: memref<4x256xbf16, #tpu.memory_space<vmem>>, %arg13: memref<1x256xf32, #tpu.memory_space<vmem>>, %arg14: memref<33x256xf32, #tpu.memory_space<vmem>>, %arg15: memref<1x4x256xbf16, #tpu.memory_space<vmem>>, %arg16: memref<1x33x256xbf16, #tpu.memory_space<vmem>>) attributes {dimension_semantics = [#tpu.dimension_semantics<parallel>, #tpu.dimension_semantics<arbitrary>, #tpu.dimension_semantics<arbitrary>], iteration_bounds = array<i64: 2, 1, 1>, scalar_prefetch = 0 : i64, scratch_operands = 5 : i64, tpu.core_type = #tpu.core_type<tc>, window_params = [{transform_indices = @transform_0, window_bounds = array<i64: 1, 32, 256>}, {transform_indices = @transform_1, window_bounds = array<i64: 1, 32, 256>}, {pipeline_mode = #tpu.pipeline_mode<synchronous>, transform_indices = @transform_2, window_bounds = array<i64: 4, 32>}, {pipeline_mode = #tpu.pipeline_mode<synchronous>, transform_indices = @transform_3, window_bounds = array<i64: 4, 32>}, {pipeline_mode = #tpu.pipeline_mode<synchronous>, transform_indices = @transform_4, window_bounds = array<i64: 32, 32>}, {pipeline_mode = #tpu.pipeline_mode<synchronous>, transform_indices = @transform_5, window_bounds = array<i64: 4, 1>}, {pipeline_mode = #tpu.pipeline_mode<synchronous>, transform_indices = @transform_6, window_bounds = array<i64: 32, 1>}, {transform_indices = @transform_7, window_bounds = array<i64: 1, 1>}, {transform_indices = @transform_8, window_bounds = array<i64: 1, 32, 256>}]} {
    %c0_i32 = arith.constant 0 : i32
    %0 = arith.cmpi eq, %arg1, %c0_i32 : i32
    %1 = arith.extui %0 : i1 to i32
    %c0_i32_0 = arith.constant 0 : i32
    %2 = arith.cmpi ne, %1, %c0_i32_0 : i32
    scf.if %2 {
      %c0_20 = arith.constant 0 : index
      %c0_21 = arith.constant 0 : index
      %c0_22 = arith.constant 0 : index
      %34 = vector.load %arg4[%c0_20, %c0_21, %c0_22] : memref<1x32x256xf32, #tpu.memory_space<vmem>>, vector<1x32x256xf32>
      %35 = vector.shape_cast %34 : vector<1x32x256xf32> to vector<32x256xf32>
      %36 = arith.truncf %35 : vector<32x256xf32> to vector<32x256xbf16>
      %c0_23 = arith.constant 0 : index
      %c0_24 = arith.constant 0 : index
      %37 = vector.load %arg6[%c0_23, %c0_24] : memref<4x32xbf16, #tpu.memory_space<vmem>>, vector<4x32xbf16>
      %cst_25 = arith.constant dense<0.000000e+00> : vector<4x256xf32>
      %38 = tpu.matmul %37, %36, %cst_25 {dimension_numbers = #tpu.dot_dimension_numbers<[1], [0], [0], [1], [0, 0, 1, 1], [], []>} : vector<4x32xbf16>, vector<32x256xbf16>, vector<4x256xf32> -> vector<4x256xf32>
      %c0_26 = arith.constant 0 : index
      %c0_27 = arith.constant 0 : index
      %39 = vector.load %arg7[%c0_26, %c0_27] : memref<32x32xbf16, #tpu.memory_space<vmem>>, vector<32x32xbf16>
      %cst_28 = arith.constant dense<0.000000e+00> : vector<32x256xf32>
      %40 = tpu.matmul %39, %36, %cst_28 {dimension_numbers = #tpu.dot_dimension_numbers<[1], [0], [0], [1], [0, 0, 1, 1], [], []>} : vector<32x32xbf16>, vector<32x256xbf16>, vector<32x256xf32> -> vector<32x256xf32>
      %cst_29 = arith.constant 1.000000e+00 : f32
      %41 = vector.broadcast %cst_29 : f32 to vector<1x256xf32>
      %42 = arith.truncf %38 : vector<4x256xf32> to vector<4x256xbf16>
      %43 = arith.index_cast %arg2 : i32 to index
      %c0_30 = arith.constant 0 : index
      %c0_31 = arith.constant 0 : index
      %44 = vector.load %arg15[%43, %c0_30, %c0_31] : memref<1x4x256xbf16, #tpu.memory_space<vmem>>, vector<1x4x256xbf16>
      %45 = vector.shape_cast %44 : vector<1x4x256xbf16> to vector<4x256xbf16>
      %46 = vector.shape_cast %42 : vector<4x256xbf16> to vector<1x4x256xbf16>
      tpu.vector_store %arg15[%43, %c0_30, %c0_31], %46 {strides = array<i32>} : memref<1x4x256xbf16, #tpu.memory_space<vmem>>, vector<1x4x256xbf16>,
      %47 = tpu.concatenate %40, %41 in 0 : vector<32x256xf32>, vector<1x256xf32> -> vector<33x256xf32>
      %48 = arith.truncf %47 : vector<33x256xf32> to vector<33x256xbf16>
      %49 = arith.index_cast %arg2 : i32 to index
      %c0_32 = arith.constant 0 : index
      %c0_33 = arith.constant 0 : index
      %50 = vector.load %arg16[%49, %c0_32, %c0_33] : memref<1x33x256xbf16, #tpu.memory_space<vmem>>, vector<1x33x256xbf16>
      %51 = vector.shape_cast %50 : vector<1x33x256xbf16> to vector<33x256xbf16>
      %52 = vector.shape_cast %48 : vector<33x256xbf16> to vector<1x33x256xbf16>
      tpu.vector_store %arg16[%49, %c0_32, %c0_33], %52 {strides = array<i32>} : memref<1x33x256xbf16, #tpu.memory_space<vmem>>, vector<1x33x256xbf16>,
    } else {
    }
    %c0_i32_1 = arith.constant 0 : i32
    %3 = arith.cmpi eq, %arg2, %c0_i32_1 : i32
    %4 = arith.extui %3 : i1 to i32
    %c0_i32_2 = arith.constant 0 : i32
    %5 = arith.cmpi ne, %4, %c0_i32_2 : i32
    scf.if %5 {
      %c0_20 = arith.constant 0 : index
      %c0_21 = arith.constant 0 : index
      %34 = vector.load %arg5[%c0_20, %c0_21] : memref<4x32xbf16, #tpu.memory_space<vmem>>, vector<4x32xbf16>
      %c0_22 = arith.constant 0 : index
      %c0_23 = arith.constant 0 : index
      %c0_24 = arith.constant 0 : index
      %35 = vector.load %arg3[%c0_22, %c0_23, %c0_24] : memref<1x32x256xf32, #tpu.memory_space<vmem>>, vector<1x32x256xf32>
      %36 = vector.shape_cast %35 : vector<1x32x256xf32> to vector<32x256xf32>
      %37 = arith.truncf %36 : vector<32x256xf32> to vector<32x256xbf16>
      %cst_25 = arith.constant dense<0.000000e+00> : vector<4x256xf32>
      %38 = tpu.matmul %34, %37, %cst_25 {dimension_numbers = #tpu.dot_dimension_numbers<[1], [0], [0], [1], [0, 0, 1, 1], [], []>} : vector<4x32xbf16>, vector<32x256xbf16>, vector<4x256xf32> -> vector<4x256xf32>
      %c0_26 = arith.constant 0 : index
      %c0_27 = arith.constant 0 : index
      %39 = vector.load %arg8[%c0_26, %c0_27] : memref<4x1xf32, #tpu.memory_space<vmem>>, vector<4x1xf32>
      %40 = vector.broadcast %39 : vector<4x1xf32> to vector<4x256xf32>
      %41 = arith.addf %38, %40 : vector<4x256xf32>
      %42 = arith.truncf %41 : vector<4x256xf32> to vector<4x256xbf16>
      %c0_28 = arith.constant 0 : index
      %c0_29 = arith.constant 0 : index
      %43 = vector.load %arg12[%c0_28, %c0_29] : memref<4x256xbf16, #tpu.memory_space<vmem>>, vector<4x256xbf16>
      tpu.vector_store %arg12[%c0_28, %c0_29], %42 {strides = array<i32>} : memref<4x256xbf16, #tpu.memory_space<vmem>>, vector<4x256xbf16>,
      %cst_30 = arith.constant 0xFF800000 : f32
      %44 = vector.broadcast %cst_30 : f32 to vector<1x256xf32>
      %c0_31 = arith.constant 0 : index
      %c0_32 = arith.constant 0 : index
      %45 = vector.load %arg13[%c0_31, %c0_32] : memref<1x256xf32, #tpu.memory_space<vmem>>, vector<1x256xf32>
      tpu.vector_store %arg13[%c0_31, %c0_32], %44 {strides = array<i32>} : memref<1x256xf32, #tpu.memory_space<vmem>>, vector<1x256xf32>,
      %cst_33 = arith.constant 0.000000e+00 : f32
      %46 = vector.broadcast %cst_33 : f32 to vector<33x256xf32>
      %c0_34 = arith.constant 0 : index
      %c0_35 = arith.constant 0 : index
      %47 = vector.load %arg14[%c0_34, %c0_35] : memref<33x256xf32, #tpu.memory_space<vmem>>, vector<33x256xf32>
      tpu.vector_store %arg14[%c0_34, %c0_35], %46 {strides = array<i32>} : memref<33x256xf32, #tpu.memory_space<vmem>>, vector<33x256xf32>,
    } else {
    }
    %6 = arith.index_cast %arg2 : i32 to index
    %c0 = arith.constant 0 : index
    %c0_3 = arith.constant 0 : index
    %7 = vector.load %arg15[%6, %c0, %c0_3] : memref<1x4x256xbf16, #tpu.memory_space<vmem>>, vector<1x4x256xbf16>
    %8 = vector.shape_cast %7 : vector<1x4x256xbf16> to vector<4x256xbf16>
    %9 = arith.index_cast %arg2 : i32 to index
    %c0_4 = arith.constant 0 : index
    %c0_5 = arith.constant 0 : index
    %10 = vector.load %arg16[%9, %c0_4, %c0_5] : memref<1x33x256xbf16, #tpu.memory_space<vmem>>, vector<1x33x256xbf16>
    %11 = vector.shape_cast %10 : vector<1x33x256xbf16> to vector<33x256xbf16>
    %c0_6 = arith.constant 0 : index
    %c0_7 = arith.constant 0 : index
    %12 = vector.load %arg12[%c0_6, %c0_7] : memref<4x256xbf16, #tpu.memory_space<vmem>>, vector<4x256xbf16>
    %cst = arith.constant dense<0.000000e+00> : vector<256x256xf32>
    %13 = tpu.matmul %8, %12, %cst {dimension_numbers = #tpu.dot_dimension_numbers<[0], [0], [1], [1], [0, 1, 1, 1], [], []>} : vector<4x256xbf16>, vector<4x256xbf16>, vector<256x256xf32> -> vector<256x256xf32>
    %c0_8 = arith.constant 0 : index
    %c0_9 = arith.constant 0 : index
    %14 = vector.load %arg13[%c0_8, %c0_9] : memref<1x256xf32, #tpu.memory_space<vmem>>, vector<1x256xf32>
    %cst_10 = arith.constant dense<0xFF800000> : vector<256xf32>
    %15 = vector.multi_reduction <maximumf>, %13, %cst_10 [0] : vector<256x256xf32> to vector<256xf32>
    %16 = vector.shape_cast %15 : vector<256xf32> to vector<1x256xf32>
    %17 = arith.maximumf %14, %16 : vector<1x256xf32>
    %18 = arith.subf %14, %17 : vector<1x256xf32>
    %19 = math.exp %18 : vector<1x256xf32>
    %20 = vector.broadcast %17 : vector<1x256xf32> to vector<256x256xf32>
    %21 = arith.subf %13, %20 : vector<256x256xf32>
    %22 = math.exp %21 : vector<256x256xf32>
    %23 = arith.truncf %22 : vector<256x256xf32> to vector<256x256xbf16>
    %c0_11 = arith.constant 0 : index
    %c0_12 = arith.constant 0 : index
    %24 = vector.load %arg14[%c0_11, %c0_12] : memref<33x256xf32, #tpu.memory_space<vmem>>, vector<33x256xf32>
    %25 = vector.broadcast %19 : vector<1x256xf32> to vector<33x256xf32>
    %26 = arith.mulf %25, %24 : vector<33x256xf32>
    %cst_13 = arith.constant dense<0.000000e+00> : vector<33x256xf32>
    %27 = tpu.matmul %11, %23, %cst_13 {dimension_numbers = #tpu.dot_dimension_numbers<[1], [0], [0], [1], [0, 0, 1, 1], [], []>} : vector<33x256xbf16>, vector<256x256xbf16>, vector<33x256xf32> -> vector<33x256xf32>
    %28 = arith.addf %26, %27 : vector<33x256xf32>
    %c0_14 = arith.constant 0 : index
    %c0_15 = arith.constant 0 : index
    %29 = vector.load %arg14[%c0_14, %c0_15] : memref<33x256xf32, #tpu.memory_space<vmem>>, vector<33x256xf32>
    tpu.vector_store %arg14[%c0_14, %c0_15], %28 {strides = array<i32>} : memref<33x256xf32, #tpu.memory_space<vmem>>, vector<33x256xf32>,
    %c0_16 = arith.constant 0 : index
    %c0_17 = arith.constant 0 : index
    %30 = vector.load %arg13[%c0_16, %c0_17] : memref<1x256xf32, #tpu.memory_space<vmem>>, vector<1x256xf32>
    tpu.vector_store %arg13[%c0_16, %c0_17], %17 {strides = array<i32>} : memref<1x256xf32, #tpu.memory_space<vmem>>, vector<1x256xf32>,
    %c0_i32_18 = arith.constant 0 : i32
    %31 = arith.cmpi eq, %arg2, %c0_i32_18 : i32
    %32 = arith.extui %31 : i1 to i32
    %c0_i32_19 = arith.constant 0 : i32
    %33 = arith.cmpi ne, %32, %c0_i32_19 : i32
    scf.if %33 {
      %c0_20 = arith.constant 0 : index
      %c0_21 = arith.constant 0 : index
      %34 = vector.load %arg14[%c0_20, %c0_21] : memref<33x256xf32, #tpu.memory_space<vmem>>, vector<33x256xf32>
      %35 = vector.extract_strided_slice %34 {offsets = [32, 0], sizes = [1, 256], strides = [1, 1]} : vector<33x256xf32> to vector<1x256xf32>
      %36 = tpu.reciprocal %35 {approx = true} : vector<1x256xf32> -> vector<1x256xf32>
      %37 = vector.extract_strided_slice %34 {offsets = [0, 0], sizes = [32, 256], strides = [1, 1]} : vector<33x256xf32> to vector<32x256xf32>
      %38 = vector.broadcast %36 : vector<1x256xf32> to vector<32x256xf32>
      %39 = arith.mulf %37, %38 : vector<32x256xf32>
      %c0_22 = arith.constant 0 : index
      %c0_23 = arith.constant 0 : index
      %40 = vector.load %arg9[%c0_22, %c0_23] : memref<32x1xf32, #tpu.memory_space<vmem>>, vector<32x1xf32>
      %41 = vector.broadcast %40 : vector<32x1xf32> to vector<32x256xf32>
      %42 = arith.addf %39, %41 : vector<32x256xf32>
      %c0_24 = arith.constant 0 : index
      %c0_25 = arith.constant 0 : index
      %43 = memref.load %arg10[%c0_24, %c0_25] : memref<1x1xf32, #tpu.memory_space<smem>>
      %44 = vector.broadcast %43 : f32 to vector<32x256xf32>
      %45 = arith.mulf %44, %42 : vector<32x256xf32>
      %c0_26 = arith.constant 0 : index
      %c0_27 = arith.constant 0 : index
      %c0_28 = arith.constant 0 : index
      %46 = vector.load %arg3[%c0_26, %c0_27, %c0_28] : memref<1x32x256xf32, #tpu.memory_space<vmem>>, vector<1x32x256xf32>
      %47 = vector.shape_cast %46 : vector<1x32x256xf32> to vector<32x256xf32>
      %48 = arith.addf %45, %47 : vector<32x256xf32>
      %c0_29 = arith.constant 0 : index
      %c0_30 = arith.constant 0 : index
      %c0_31 = arith.constant 0 : index
      %49 = vector.load %arg11[%c0_29, %c0_30, %c0_31] : memref<1x32x256xf32, #tpu.memory_space<vmem>>, vector<1x32x256xf32>
      %50 = vector.shape_cast %49 : vector<1x32x256xf32> to vector<32x256xf32>
      %51 = vector.shape_cast %48 : vector<32x256xf32> to vector<1x32x256xf32>
      tpu.vector_store %arg11[%c0_29, %c0_30, %c0_31], %51 {strides = array<i32>} : memref<1x32x256xf32, #tpu.memory_space<vmem>>, vector<1x32x256xf32>,
    } else {
    }
    return
  }
  func.func @transform_0(%arg0: i32, %arg1: i32, %arg2: i32) -> (i32, i32, i32) {
    %c0_i32 = arith.constant 0 : i32
    %c0_i32_0 = arith.constant 0 : i32
    return %arg0, %c0_i32, %arg1 : i32, i32, i32
  }
  func.func @transform_1(%arg0: i32, %arg1: i32, %arg2: i32) -> (i32, i32, i32) {
    %c0_i32 = arith.constant 0 : i32
    %0 = arith.cmpi eq, %arg1, %c0_i32 : i32
    %c0_i32_0 = arith.constant 0 : i32
    %1 = arith.select %0, %arg2, %c0_i32_0 : i32
    %c0_i32_1 = arith.constant 0 : i32
    %c0_i32_2 = arith.constant 0 : i32
    return %arg0, %c0_i32_1, %1 : i32, i32, i32
  }
  func.func @transform_2(%arg0: i32, %arg1: i32, %arg2: i32) -> (i32, i32) {
    %c0_i32 = arith.constant 0 : i32
    %c0_i32_0 = arith.constant 0 : i32
    %c0_i32_1 = arith.constant 0 : i32
    return %c0_i32, %c0_i32_0 : i32, i32
  }
  func.func @transform_3(%arg0: i32, %arg1: i32, %arg2: i32) -> (i32, i32) {
    %c0_i32 = arith.constant 0 : i32
    %c0_i32_0 = arith.constant 0 : i32
    %c0_i32_1 = arith.constant 0 : i32
    return %c0_i32, %c0_i32_0 : i32, i32
  }
  func.func @transform_4(%arg0: i32, %arg1: i32, %arg2: i32) -> (i32, i32) {
    %c0_i32 = arith.constant 0 : i32
    %c0_i32_0 = arith.constant 0 : i32
    %c0_i32_1 = arith.constant 0 : i32
    return %c0_i32, %c0_i32_0 : i32, i32
  }
  func.func @transform_5(%arg0: i32, %arg1: i32, %arg2: i32) -> (i32, i32) {
    %c0_i32 = arith.constant 0 : i32
    %c0_i32_0 = arith.constant 0 : i32
    %c0_i32_1 = arith.constant 0 : i32
    return %c0_i32, %c0_i32_0 : i32, i32
  }
  func.func @transform_6(%arg0: i32, %arg1: i32, %arg2: i32) -> (i32, i32) {
    %c0_i32 = arith.constant 0 : i32
    %c0_i32_0 = arith.constant 0 : i32
    %c0_i32_1 = arith.constant 0 : i32
    return %c0_i32, %c0_i32_0 : i32, i32
  }
  func.func @transform_7(%arg0: i32, %arg1: i32, %arg2: i32) -> (i32, i32) {
    %c0_i32 = arith.constant 0 : i32
    %c0_i32_0 = arith.constant 0 : i32
    %c0_i32_1 = arith.constant 0 : i32
    return %c0_i32, %c0_i32_0 : i32, i32
  }
  func.func @transform_8(%arg0: i32, %arg1: i32, %arg2: i32) -> (i32, i32, i32) {
    %c0_i32 = arith.constant 0 : i32
    %c0_i32_0 = arith.constant 0 : i32
    return %arg0, %c0_i32, %arg1 : i32, i32, i32
  }
}

</mosaic_0001>

<bundles_post_ra>
// kernel: attention_block.1
= control target key start
LH: loop header
LB: loop body
LE: loop exit
PB: predicated region body
PF: predicated region fallthrough
CT: control target
= control target key end

     0   :  { %s1916_s29 = smov 0   ;;  %s1918_s30 = smov 0   ;;  %s2463_s0 = inlined_call_operand.vmem [shape: f32[2,32,256], index: 0, kind: input, shape index: {}, may-alias: {0,1}]   ;;  %s2464_s1 = inlined_call_operand.vmem [shape: f32[2,32,256], index: 1, kind: input, shape index: {}, may-alias: {0,1}]   ;;  %s2465_s2 = inlined_call_operand.vmem [shape: bf16[4,32], index: 2, kind: input, shape index: {}]   ;;  %s2466_s3 = inlined_call_operand.vmem [shape: bf16[4,32], index: 3, kind: input, shape index: {}]   ;;  %s2467_s4 = inlined_call_operand.vmem [shape: bf16[32,32], index: 4, kind: input, shape index: {}]   ;;  %s2468_s5 = inlined_call_operand.vmem [shape: f32[4,1], index: 5, kind: input, shape index: {}]   ;;  %s2469_s6 = inlined_call_operand.vmem [shape: f32[32,1], index: 6, kind: input, shape index: {}]   ;;  %s2470_s7 = inlined_call_operand.<no memory space> [shape: f32[1,1], index: 7, kind: input, shape index: {}]   ;;  %s2471_s8 = inlined_call_operand.vmem [shape: f32[2,32,256], index: 8, kind: output, shape index: {}]  }
   0x1   :  { %13 = sst [smem:[#allocation7]] %s2470_s7  ;;  %s1920_s9 = smov 0  }
   0x2 LB: > { %s38_s7 = sadd.s32 1, %s1859_s30  ;;  %p1593_p0 = scmp.ge.s32.totalorder %s1863_s9, 1  ;;  %s1863_s9 = sphi %s1920_s9, %s19_s9   ;;  %s1859_s30 = sphi %s1918_s30, %s2547_s30   ;;  %s1855_s29 = sphi %s1916_s29, %s2546_s29  }
   0x3   : > { %p40_p1 = scmp.ge.s32.totalorder %s38_s7, 2  ;;  %p316_p2 = scmp.lt.s32.totalorder %s1863_s9, 3 }
   0x5   : > { %s2549_s7 = smov (%p40_p1, %s38_s7), 0  ;;  %p317_p3 = pnand %p1593_p0, %p316_p2 }
   0x7   : > { %320 = sbr.rel (%p317_p3) target bundleno = 993 (0x3e1), region = 52 }
   0xc   : > { %p370_p4 = scmp.lt.s32.totalorder %s1855_s29, 1  ;;  %v560_v0 = vld [vmem:[%s2468_s5] sm:$0xf]  ;;  %v1865_v1 = vmov 0   ;;  %vm421_vm0 = vcmask 261120   ;;  %vm512_vm1 = vcmask 1041408  }
   0xd   : > { %1704 = vset.pattern.permute.xlu0 %v1865_v1  ;;  %1705 = vset.pattern.permute.xlu1 %v1865_v1  ;;  %v420_v24 = vld [vmem:[%s2466_s3] sm:$0x3]  ;;  %vm667_vm2 = vcmask 31744   ;;  %v1670_v55 = vld [vmem:[%s2467_s4 + $0x8] sm:$0xff]  ;;  %vm533_vm4 = vcmask 1040384   ;;  %vm536_vm7 = vcmask 1044484  }
   0xe   : > { %s2551_s29 = smov (!%p370_p4, %s1855_s29), 1  ;;  %563 = vperm.xlu0 %1704, %v560_v0   ;;  %1706 = vset.pattern.permute.xlu2 %v1865_v1  ;;  %v547_v27 = vld [vmem:[%s2465_s2] sm:$0x3]  ;;  %vm534_vm5 = vsmask.f32 256  ;;  %s1439_s17 = sld [smem:[#allocation7]] }
   0xf   : > { %s1937_s12 = sshll.u32 %s2551_s29, 6  ;;  %v1669_v53 = vld [vmem:[%s2467_s4] sm:$0xff]  ;;  %vm535_vm6 = vmand %vm533_vm4, %vm534_vm5  ;;  %vm537_vm8 = vsmask.f32 4352 }
  0x10   : > { %s1943_s15 = scalar_lea.vmem %s2463_s0, %s1937_s12  ;;  %s389_s18 = scalar_lea.vmem %s2464_s1, %s1937_s12  ;;  %vm538_vm9 = vmand %vm536_vm7, %vm537_vm8 }
  0x11   : > { %v412_v2 = vld [vmem:[%s389_s18 + $0x20] sm:$0xff]  ;;  %v414_v3 = vld [vmem:[%s389_s18 + $0x30] sm:$0xff]  ;;  %v413_v4 = vld [vmem:[%s389_s18 + $0x28] sm:$0xff]  ;;  %s2433_s20 = scalar_lea.vmem %s2471_s8, %s1937_s12 }
  0x12   : > { %v418_v5 = vpack.c.bf16 %v414_v3, %v412_v2  ;;  %v415_v6 = vld [vmem:[%s389_s18 + $0x38] sm:$0xff]  ;;  %v408_v7 = vld [vmem:[%s389_s18] sm:$0xff]  ;;  %v410_v8 = vld [vmem:[%s389_s18 + $0x10] sm:$0xff] }
  0x13   : > { %v419_v9 = vpack.c.bf16 %v415_v6, %v413_v4  ;;  %v409_v10 = vld [vmem:[%s389_s18 + $0x8] sm:$0xff]  ;;  %v411_v11 = vld [vmem:[%s389_s18 + $0x18] sm:$0xff]  ;;  %v552_v12 = vld [vmem:[%s1943_s15 + $0x20] sm:$0xff]  ;;  %v416_v13 = vpack.c.bf16 %v410_v8, %v408_v7 }
  0x14   : > { %431 = vmatpush.bf16.msra.mxu0 %v418_v5  ;;  %v554_v14 = vld [vmem:[%s1943_s15 + $0x30] sm:$0xff]  ;;  %v553_v15 = vld [vmem:[%s1943_s15 + $0x28] sm:$0xff]  ;;  %v555_v16 = vld [vmem:[%s1943_s15 + $0x38] sm:$0xff]  ;;  %477 = vmatpush.bf16.msra.mxu2 %v418_v5  ;;  %v417_v17 = vpack.c.bf16 %v411_v11, %v409_v10 }
  0x15   : > { %444 = vmatpush.bf16.msra.mxu1 %v419_v9  ;;  %v558_v18 = vpack.c.bf16 %v554_v14, %v552_v12  ;;  %496 = vmatpush.bf16.msra.mxu3 %v419_v9  ;;  %v559_v19 = vpack.c.bf16 %v555_v16, %v553_v15  ;;  %v548_v20 = vld [vmem:[%s1943_s15] sm:$0xff]  ;;  %v550_v21 = vld [vmem:[%s1943_s15 + $0x10] sm:$0xff]  ;;  %v549_v22 = vld [vmem:[%s1943_s15 + $0x8] sm:$0xff] }
  0x16   : > { %v551_v23 = vld [vmem:[%s1943_s15 + $0x18] sm:$0xff]  ;;  %v556_v25 = vpack.c.bf16 %v550_v21, %v548_v20  ;;  %vm539_vm10 = vmor %vm538_vm9, %vm535_vm6 }
  0x17   : > { %v557_v26 = vpack.c.bf16 %v551_v23, %v549_v22 }
  0x18   : > { %432 = vmatpush.bf16.msra.mxu0 %v416_v13  ;;  %478 = vmatpush.bf16.msra.mxu2 %v416_v13 }
  0x19   : > { %445 = vmatpush.bf16.msra.mxu1 %v417_v17  ;;  %497 = vmatpush.bf16.msra.mxu3 %v417_v17 }
  0x1b   : > { %1600 = vmatmul.msk.bf16.vlgmr.msra.gmra.mxu0 %vm421_vm0, %v420_v24  ;;  %1610 = vmatmul.msk.bf16.vlgmr.msra.gmra.mxu2 %vm421_vm0, %v1669_v53 }
  0x1c   : > { %576 = vmatpush.bf16.msrb.mxu0 %v558_v18  ;;  %1601 = vmatmul.msk.bf16.vlgmr.msra.gmra.mxu1 %vm421_vm0, %v420_v24 }
  0x1d   : > { %589 = vmatpush.bf16.msrb.mxu1 %v559_v19  ;;  %1612 = vmatmul.msk.bf16.vlgmr.msra.gmra.mxu3 %vm421_vm0, %v1669_v53 }
  0x20   : > { %577 = vmatpush.bf16.msrb.mxu0 %v556_v25 }
  0x21   : > { %590 = vmatpush.bf16.msrb.mxu1 %v557_v26 }
  0x2b   : > { %1614 = vmatmul.msk.bf16.vlgmr.msrb.gmra.mxu0 %vm421_vm0, %v547_v27  ;;  %1611 = vmatmul.msk.bf16.gmra.mxu2 %vm421_vm0, %v1670_v55 }
  0x2c   : > { %1615 = vmatmul.msk.bf16.vlgmr.msrb.gmra.mxu1 %vm421_vm0, %v547_v27 }
  0x2d   : > { %1613 = vmatmul.msk.bf16.gmra.mxu3 %vm421_vm0, %v1670_v55 }
  0x80   : > { %v564_v36 = vpop.permute.xlu0 %563 }
  0x98   : > { %v434_v28 = vpop.f32.mrf.mxu0 }
  0x99   : > { %v447_v29 = vpop.f32.mrf.mxu1 }
  0x9a   : > { %v509_v30 = vpack.c.bf16 %v447_v29, %v434_v28 }
  0x9c   : > { %v511_v31 = vrot.slane %v509_v30, 2 }
  0x9e   : > { %v515_v32 = vsel %vm512_vm1, %v509_v30, %v511_v31  ;;  %v480_v7 = vpop.f32.mrf.mxu2 }
  0x9f   : > { %520 = vst [vmem:[#allocation5] sm:$0xf] %v515_v32 }
  0xa0   : > { %v436_v33 = vpop.f32.mrf.mxu0  ;;  %v499_v8 = vpop.f32.mrf.mxu3 }
  0xa1   : > { %v449_v34 = vpop.f32.mrf.mxu1  ;;  %v521_v9 = vpack.c.bf16 %v499_v8, %v480_v7 }
  0xa3   : > { %529 = vst [vmem:[#allocation6] sm:$0xff] %v521_v9 }
  0xa6   : > { %v623_v35 = vld [vmem:[#allocation5] sm:$0xf]  ;;  %v482_v12 = vpop.f32.mrf.mxu2 }
  0xa7   : > { %634 = vst [vmem:[#allocation1] ss:$4 sm:$0xff] %v623_v35 }
  0xa8   : > { %v579_v37 = vpop.f32.mrf.mxu0  ;;  %v501_v13 = vpop.f32.mrf.mxu3 }
  0xa9   : > { %v580_v38 = vadd.f32 %v579_v37, %v564_v36  ;;  %v592_v39 = vpop.f32.mrf.mxu1  ;;  %v522_v14 = vpack.c.bf16 %v501_v13, %v482_v12 }
  0xaa   : > { %v593_v40 = vadd.f32 %v592_v39, %v564_v36 }
  0xab   : > { %530 = vst [vmem:[#allocation6 + $0x8] sm:$0xff] %v522_v14 }
  0xac   : > { %v596_v41 = vpack.c.bf16 %v593_v40, %v580_v38 }
  0xae   : > { %v635_v42 = vld.sshfl [vmem:[#allocation1] sm:$0xff pattern:$0x73625140]  ;;  %v636_v43 = vld.sshfl [vmem:[#allocation1 + $0x8] sm:$0xff pattern:$0x73625140]  ;;  %v485_v17 = vpop.f32.mrf.mxu2 }
  0xaf   : > { %639 = vxpose.binary.xlu0.c.b16.start.end [1/2] (short) %v636_v43, %v635_v42, 128  ;;  %v598_v44 = vrot.slane %v596_v41, 2 }
  0xb0   : > { %v581_v45 = vpop.f32.mrf.mxu0  ;;  %v504_v18 = vpop.f32.mrf.mxu3 }
  0xb1   : > { %v602_v46 = vsel %vm512_vm1, %v596_v41, %v598_v44  ;;  %v594_v47 = vpop.f32.mrf.mxu1  ;;  %v523_v19 = vpack.c.bf16 %v504_v18, %v485_v17 }
  0xb2   : > { %604 = vst [vmem:[#allocation2] sm:$0xf] %v602_v46 }
  0xb3   : > { %531 = vst [vmem:[#allocation6 + $0x10] sm:$0xff] %v523_v19 }
  0xb6   : > { %v487_v22 = vpop.f32.mrf.mxu2 }
  0xb8   : > { %v506_v23 = vpop.f32.mrf.mxu3 }
  0xb9   : > { %v632_v48 = vld [vmem:[#allocation2] sm:$0xf]  ;;  %v524_v24 = vpack.c.bf16 %v506_v23, %v487_v22 }
  0xba   : > { %664 = vst [vmem:[#allocation1] ss:$4 sm:$0xff] %v632_v48 }
  0xbb   : > { %532 = vst [vmem:[#allocation6 + $0x18] sm:$0xff] %v524_v24 }
  0xc1   : > { %v665_v49 = vld.sshfl [vmem:[#allocation1] sm:$0xff pattern:$0x73625140]  ;;  %v666_v50 = vld.sshfl [vmem:[#allocation1 + $0x8] sm:$0xff pattern:$0x73625140] }
  0xc2   : > { %v717_v51 = vsel %vm512_vm1, %v665_v49, 0  ;;  %v719_v52 = vsel %vm512_vm1, %v666_v50, 0 }
  0xc3   : > { %728 = vmatpush.bf16.msra.mxu0 %v717_v51  ;;  %1675 = vmatpush.bf16.msrb.mxu2 %v717_v51 }
  0xc4   : > { %817 = vmatpush.bf16.msra.mxu1 %v719_v52  ;;  %1676 = vmatpush.bf16.msrb.mxu3 %v719_v52 }
 0x15b   : > { %v647_v54 = vpop.trf.xlu0 }
 0x15c   : > { %1616 = vmatmul.msk.bf16.vlgmr.msra.gmra.mxu0 %vm667_vm2, %v647_v54  ;;  %1632 = vmatmul.msk.bf16.vlgmr.msra.gmra.mxu1 %vm667_vm2, %v647_v54 }
 0x163   : > { %v648_v56 = vpop.trf.xlu0 }
 0x16b   : > { %v649_v57 = vpop.trf.xlu0 }
 0x16c   : > { %1617 = vmatmul.msk.bf16.gmra.mxu0 %vm667_vm2, %v649_v57  ;;  %1633 = vmatmul.msk.bf16.gmra.mxu1 %vm667_vm2, %v649_v57 }
 0x173   : > { %v650_v58 = vpop.trf.xlu0 }
 0x17b   : > { %v651_v59 = vpop.trf.xlu0 }
 0x17c   : > { %1618 = vmatmul.msk.bf16.gmra.mxu0 %vm667_vm2, %v651_v59  ;;  %1634 = vmatmul.msk.bf16.gmra.mxu1 %vm667_vm2, %v651_v59 }
 0x183   : > { %v652_v60 = vpop.trf.xlu0 }
 0x18b   : > { %v653_v61 = vpop.trf.xlu0 }
 0x18c   : > { %1619 = vmatmul.msk.bf16.gmra.mxu0 %vm667_vm2, %v653_v61  ;;  %1635 = vmatmul.msk.bf16.gmra.mxu1 %vm667_vm2, %v653_v61 }
 0x193   : > { %v654_v62 = vpop.trf.xlu0 }
 0x194   : > { %1627 = vmatmul.msk.bf16.vlgmr.msrb.gmra.mxu2 %vm667_vm2, %v654_v62  ;;  %1643 = vmatmul.msk.bf16.vlgmr.msrb.gmra.mxu3 %vm667_vm2, %v654_v62 }
 0x19b   : > { %v655_v63 = vpop.trf.xlu0 }
 0x19c   : > { %1620 = vmatmul.msk.bf16.gmra.mxu0 %vm667_vm2, %v655_v63  ;;  %1636 = vmatmul.msk.bf16.gmra.mxu1 %vm667_vm2, %v655_v63 }
 0x1a3   : > { %v656_v0 = vpop.trf.xlu0 }
 0x1a4   : > { %1628 = vmatmul.msk.bf16.gmra.mxu2 %vm667_vm2, %v656_v0  ;;  %1644 = vmatmul.msk.bf16.gmra.mxu3 %vm667_vm2, %v656_v0 }
 0x1ab   : > { %v657_v1 = vpop.trf.xlu0 }
 0x1ac   : > { %1621 = vmatmul.msk.bf16.gmra.mxu0 %vm667_vm2, %v657_v1  ;;  %1637 = vmatmul.msk.bf16.gmra.mxu1 %vm667_vm2, %v657_v1 }
 0x1b3   : > { %v658_v2 = vpop.trf.xlu0 }
 0x1b4   : > { %1629 = vmatmul.msk.bf16.gmra.mxu2 %vm667_vm2, %v658_v2  ;;  %1645 = vmatmul.msk.bf16.gmra.mxu3 %vm667_vm2, %v658_v2 }
 0x1bb   : > { %v659_v3 = vpop.trf.xlu0 }
 0x1bc   : > { %1622 = vmatmul.msk.bf16.gmra.mxu0 %vm667_vm2, %v659_v3  ;;  %1638 = vmatmul.msk.bf16.gmra.mxu1 %vm667_vm2, %v659_v3 }
 0x1c3   : > { %v660_v4 = vpop.trf.xlu0 }
 0x1c4   : > { %1630 = vmatmul.msk.bf16.gmra.mxu2 %vm667_vm2, %v660_v4  ;;  %1646 = vmatmul.msk.bf16.gmra.mxu3 %vm667_vm2, %v660_v4 }
 0x1cb   : > { %v661_v5 = vpop.trf.xlu0 }
 0x1cc   : > { %1623 = vmatmul.msk.bf16.gmra.mxu0 %vm667_vm2, %v661_v5  ;;  %1639 = vmatmul.msk.bf16.gmra.mxu1 %vm667_vm2, %v661_v5 }
 0x1d3   : > { %v662_v6 = vpop.trf.xlu0 }
 0x1d4   : > { %1631 = vmatmul.msk.bf16.gmra.mxu2 %vm667_vm2, %v662_v6  ;;  %1647 = vmatmul.msk.bf16.gmra.mxu3 %vm667_vm2, %v662_v6 }
 0x1d9   : > { %v2007_v10 = vpop.f32.mrf.mxu0  ;;  %v2009_v11 = vpop.f32.mrf.mxu1 }
 0x1da   : > { %2496 = vst [vmem:[#allocation8_spill] sm:$0xff] %v2009_v11 }
 0x1dc   : > { %1624 = vmatmul.msk.bf16.gmra.mxu0 %vm667_vm2, %v648_v56  ;;  %1640 = vmatmul.msk.bf16.gmra.mxu1 %vm667_vm2, %v648_v56 }
 0x1e1   : > { %v2013_v15 = vpop.f32.mrf.mxu0  ;;  %v2015_v16 = vpop.f32.mrf.mxu1 }
 0x1e2   : > { %2497 = vst [vmem:[#allocation9_spill] sm:$0xff] %v2015_v16 }
 0x1e9   : > { %v2017_v20 = vpop.f32.mrf.mxu0  ;;  %v2019_v21 = vpop.f32.mrf.mxu1 }
 0x1ea   : > { %2498 = vst [vmem:[#allocation10_spill] sm:$0xff] %v2019_v21  ;;  %v900_v3 = vmax.f32 %v2007_v10, %v2017_v20  ;;  %v937_v4 = vmax.f32 %v2009_v11, %v2019_v21 }
 0x1ec   : > { %1625 = vmatmul.msk.bf16.gmra.mxu0 %vm667_vm2, %v650_v58  ;;  %1641 = vmatmul.msk.bf16.gmra.mxu1 %vm667_vm2, %v650_v58 }
 0x1f1   : > { %v2023_v25 = vpop.f32.mrf.mxu0  ;;  %v2025_v26 = vpop.f32.mrf.mxu1 }
 0x1f2   : > { %2499 = vst [vmem:[#allocation11_spill] sm:$0xff] %v2025_v26  ;;  %v901_v19 = vmax.f32 %v2013_v15, %v2023_v25  ;;  %v938_v22 = vmax.f32 %v2015_v16, %v2025_v26  ;;  %v605_v26 = vlaneseq }
 0x1f4   : > { %vm2149_vm3 = vcmp.lt.s32.totalorder %v605_v26, 256 }
 0x1f9   : > { %v2027_v27 = vpop.f32.mrf.mxu0  ;;  %v2029_v28 = vpop.f32.mrf.mxu1 }
 0x1fa   : > { %2500 = vst [vmem:[#allocation12_spill] sm:$0xff] %v2029_v28  ;;  %v902_v7 = vmax.f32 %v900_v3, %v2027_v27  ;;  %v939_v8 = vmax.f32 %v937_v4, %v2029_v28 }
 0x1fc   : > { %1626 = vmatmul.msk.bf16.gmra.mxu0 %vm667_vm2, %v652_v60  ;;  %1642 = vmatmul.msk.bf16.gmra.mxu1 %vm667_vm2, %v652_v60 }
 0x201   : > { %v2033_v29 = vpop.f32.mrf.mxu0  ;;  %v2035_v30 = vpop.f32.mrf.mxu1 }
 0x202   : > { %2501 = vst [vmem:[#allocation13_spill] sm:$0xff] %v2035_v30  ;;  %v903_v3 = vmax.f32 %v901_v19, %v2033_v29  ;;  %v940_v4 = vmax.f32 %v938_v22, %v2035_v30 }
 0x209   : > { %v2037_v31 = vpop.f32.mrf.mxu0  ;;  %v2039_v32 = vpop.f32.mrf.mxu1 }
 0x20a   : > { %v904_v9 = vmax.f32 %v902_v7, %v2037_v31  ;;  %v941_v12 = vmax.f32 %v939_v8, %v2039_v32 }
 0x211   : > { %v2041_v33 = vpop.f32.mrf.mxu0  ;;  %v2043_v34 = vpop.f32.mrf.mxu1 }
 0x212   : > { %2502 = vst [vmem:[#allocation14_spill] sm:$0xff] %v2043_v34  ;;  %v905_v11 = vmax.f32 %v903_v3, %v2041_v33  ;;  %v942_v16 = vmax.f32 %v940_v4, %v2043_v34  ;;  %v1866_v4 = vmov -inf  }
 0x213   : > { %609 = vst.msk [vmem:[#allocation3] sm:$0x3] %vm2149_vm3, %v1866_v4 }
 0x217   : > { %v2061_v43 = vpop.f32.mrf.mxu2  ;;  %v2063_v44 = vpop.f32.mrf.mxu3 }
 0x218   : > { %2503 = vst [vmem:[#allocation15_spill] sm:$0xff] %v2061_v43 }
 0x219   : > { %v2045_v35 = vpop.f32.mrf.mxu0  ;;  %v2047_v36 = vpop.f32.mrf.mxu1  ;;  %2504 = vst [vmem:[#allocation16_spill] sm:$0xff] %v2063_v44 }
 0x21a   : > { %v906_v13 = vmax.f32 %v904_v9, %v2045_v35  ;;  %v943_v14 = vmax.f32 %v941_v12, %v2047_v36 }
 0x21f   : > { %v2069_v47 = vpop.f32.mrf.mxu2  ;;  %v2071_v48 = vpop.f32.mrf.mxu3 }
 0x220   : > { %2505 = vst [vmem:[#allocation17_spill] sm:$0xff] %v2069_v47 }
 0x221   : > { %v2049_v37 = vpop.f32.mrf.mxu0  ;;  %v2051_v38 = vpop.f32.mrf.mxu1  ;;  %2506 = vst [vmem:[#allocation18_spill] sm:$0xff] %v2071_v48 }
 0x222   : > { %v907_v19 = vmax.f32 %v905_v11, %v2049_v37  ;;  %v944_v22 = vmax.f32 %v942_v16, %v2051_v38 }
 0x227   : > { %v2077_v51 = vpop.f32.mrf.mxu2  ;;  %v2079_v52 = vpop.f32.mrf.mxu3 }
 0x228   : > { %2507 = vst [vmem:[#allocation19_spill] sm:$0xff] %v2079_v52 }
 0x229   : > { %v2053_v39 = vpop.f32.mrf.mxu0  ;;  %v2055_v40 = vpop.f32.mrf.mxu1 }
 0x22a   : > { %v908_v23 = vmax.f32 %v906_v13, %v2053_v39  ;;  %v945_v24 = vmax.f32 %v943_v14, %v2055_v40 }
 0x22f   : > { %v2085_v55 = vpop.f32.mrf.mxu2  ;;  %v2087_v56 = vpop.f32.mrf.mxu3 }
 0x230   : > { %2508 = vst [vmem:[#allocation20_spill] sm:$0xff] %v2087_v56 }
 0x231   : > { %v2057_v41 = vpop.f32.mrf.mxu0  ;;  %v2059_v42 = vpop.f32.mrf.mxu1 }
 0x232   : > { %v946_v3 = vmax.f32 %v944_v22, %v2059_v42 }
 0x237   : > { %v2097_v61 = vpop.f32.mrf.mxu2  ;;  %v2099_v62 = vpop.f32.mrf.mxu3 }
 0x238   : > { %2511 = vst [vmem:[#allocation23_spill] sm:$0xff] %v2099_v62 }
 0x239   : > { %v2065_v45 = vpop.f32.mrf.mxu0  ;;  %v2067_v46 = vpop.f32.mrf.mxu1 }
 0x23a   : > { %v910_v9 = vmax.f32 %v908_v23, %v2065_v45  ;;  %v947_v12 = vmax.f32 %v945_v24, %v2067_v46  ;;  %v909_v24 = vmax.f32 %v907_v19, %v2057_v41 }
 0x23f   : > { %v2105_v1 = vpop.f32.mrf.mxu2  ;;  %v2107_v2 = vpop.f32.mrf.mxu3 }
 0x240   : > { %2514 = vst [vmem:[#allocation26_spill] sm:$0xff] %v2107_v2 }
 0x241   : > { %v2073_v49 = vpop.f32.mrf.mxu0  ;;  %v2075_v50 = vpop.f32.mrf.mxu1 }
 0x242   : > { %v911_v26 = vmax.f32 %v909_v24, %v2073_v49 }
 0x247   : > { %v2123_v17 = vpop.f32.mrf.mxu2  ;;  %v2125_v18 = vpop.f32.mrf.mxu3 }
 0x248   : > { %2516 = vst [vmem:[#allocation28_spill] sm:$0xff] %v2125_v18 }
 0x249   : > { %v2081_v53 = vpop.f32.mrf.mxu0  ;;  %v2083_v54 = vpop.f32.mrf.mxu1 }
 0x24a   : > { %v912_v13 = vmax.f32 %v910_v9, %v2081_v53  ;;  %v949_v14 = vmax.f32 %v947_v12, %v2083_v54 }
 0x24f   : > { %v2157_v9 = vpop.f32.mrf.mxu2  ;;  %v2159_v11 = vpop.f32.mrf.mxu3 }
 0x250   : > { %2520 = vst [vmem:[#allocation30_spill] sm:$0xff] %v2159_v11 }
 0x251   : > { %v2089_v57 = vpop.f32.mrf.mxu0  ;;  %v2091_v58 = vpop.f32.mrf.mxu1 }
 0x257   : > { %v2182_v34 = vpop.f32.mrf.mxu2 }
 0x259   : > { %v2093_v59 = vpop.f32.mrf.mxu0  ;;  %v2095_v60 = vpop.f32.mrf.mxu1 }
 0x25a   : > { %2509 = vst [vmem:[#allocation21_spill] sm:$0xff] %v2093_v59  ;;  %v914_v21 = vmax.f32 %v912_v13, %v2093_v59  ;;  %v951_v30 = vmax.f32 %v949_v14, %v2095_v60  ;;  %v948_v13 = vmax.f32 %v946_v3, %v2075_v50 }
 0x25b   : > { %2510 = vst [vmem:[#allocation22_spill] sm:$0xff] %v2095_v60 }
 0x25c   : > { %v950_v24 = vmax.f32 %v948_v13, %v2091_v58 }
 0x261   : > { %v2101_v63 = vpop.f32.mrf.mxu0  ;;  %v2103_v0 = vpop.f32.mrf.mxu1 }
 0x262   : > { %2512 = vst [vmem:[#allocation24_spill] sm:$0xff] %v2101_v63 }
 0x263   : > { %2513 = vst [vmem:[#allocation25_spill] sm:$0xff] %v2103_v0 }
 0x269   : > { %v2113_v5 = vpop.f32.mrf.mxu0  ;;  %v2115_v6 = vpop.f32.mrf.mxu1 }
 0x26a   : > { %2515 = vst [vmem:[#allocation27_spill] sm:$0xff] %v2113_v5  ;;  %v916_v16 = vmax.f32 %v914_v21, %v2113_v5  ;;  %v953_v12 = vmax.f32 %v951_v30, %v2115_v6  ;;  %v540_v21 = vld [vmem:[#allocation6 + $0x20] sm:$0x11]  ;;  %v913_v30 = vmax.f32 %v911_v26, %v2089_v57 }
 0x26b   : > { %v541_v59 = vsel %vm539_vm10, 1.0|1.0, %v540_v21 }
 0x26c   : > { %542 = vst [vmem:[#allocation6 + $0x20] sm:$0x11] %v541_v59 }
 0x271   : > { %v2135_v7 = vpop.f32.mrf.mxu0  ;;  %v2137_v8 = vpop.f32.mrf.mxu1 }
 0x272   : > { %2517 = vst [vmem:[#allocation29_spill] sm:$0xff] %v2135_v7 }
 0x279   : > { %v2165_v14 = vpop.f32.mrf.mxu0  ;;  %v2167_v19 = vpop.f32.mrf.mxu1 }
 0x27a   : > { %v918_v22 = vmax.f32 %v916_v16, %v2165_v14  ;;  %v955_v4 = vmax.f32 %v953_v12, %v2167_v19  ;;  %v915_v16 = vmax.f32 %v913_v30, %v2101_v63  ;;  %v952_v12 = vmax.f32 %v950_v24, %v2103_v0 }
 0x27c   : > { %v920_v3 = vmax.f32 %v918_v22, %v2061_v43  ;;  %v957_v60 = vmax.f32 %v955_v4, %v2063_v44  ;;  %v917_v5 = vmax.f32 %v915_v16, %v2135_v7  ;;  %v954_v28 = vmax.f32 %v952_v12, %v2137_v8  ;;  %v2184_v22 = vpop.f32.mrf.mxu3  ;;  %v899_v43 = vld [vmem:[#allocation3] sm:$0x3] }
 0x27d   : > { %2521 = vst [vmem:[#allocation31_spill] sm:$0xff] %v2184_v22 }
 0x27e   : > { %v922_v26 = vmax.f32 %v920_v3, %v2077_v51  ;;  %v959_v13 = vmax.f32 %v957_v60, %v2079_v52 }
 0x280   : > { %v924_v21 = vmax.f32 %v922_v26, %v2097_v61  ;;  %v961_v24 = vmax.f32 %v959_v13, %v2099_v62  ;;  %v2204_v62 = vpop.f32.mrf.mxu2 }
 0x281   : > { %v2186_v4 = vpop.f32.mrf.mxu0  ;;  %v2188_v44 = vpop.f32.mrf.mxu1 }
 0x282   : > { %v919_v30 = vmax.f32 %v917_v5, %v2186_v4  ;;  %v956_v59 = vmax.f32 %v954_v28, %v2188_v44  ;;  %v926_v0 = vmax.f32 %v924_v21, %v2123_v17  ;;  %v963_v52 = vmax.f32 %v961_v24, %v2125_v18 }
 0x284   : > { %v921_v3 = vmax.f32 %v919_v30, %v2069_v47  ;;  %v958_v60 = vmax.f32 %v956_v59, %v2071_v48  ;;  %v2206_v30 = vpop.f32.mrf.mxu3  ;;  %v928_v59 = vmax.f32 %v926_v0, %v2182_v34 }
 0x286   : > { %v923_v16 = vmax.f32 %v921_v3, %v2085_v55  ;;  %v960_v12 = vmax.f32 %v958_v60, %v2087_v56  ;;  %v965_v3 = vmax.f32 %v963_v52, %v2184_v22 }
 0x288   : > { %v925_v5 = vmax.f32 %v923_v16, %v2105_v1  ;;  %v962_v28 = vmax.f32 %v960_v12, %v2107_v2 }
 0x28a   : > { %v927_v26 = vmax.f32 %v925_v5, %v2157_v9  ;;  %v964_v13 = vmax.f32 %v962_v28, %v2159_v11 }
 0x28c   : > { %v929_v21 = vmax.f32 %v927_v26, %v2204_v62  ;;  %v966_v24 = vmax.f32 %v964_v13, %v2206_v30 }
 0x28e   : > { %v930_v60 = vmax.f32 %v928_v59, %v929_v21  ;;  %v967_v16 = vmax.f32 %v965_v3, %v966_v24  ;;  %v1867_v21 = vmov 0.0  }
 0x28f   : > { %618 = vst [vmem:[#allocation4 + $0x40] sm:$0x1] %v1867_v21 }
 0x290   : > { %v931_v48 = vrot.slane %v930_v60, 4  ;;  %v968_v12 = vrot.slane %v967_v16, 4  ;;  %619 = vst [vmem:[#allocation4 + $0x38] sm:$0x1] %v1867_v21 }
 0x292   : > { %v932_v56 = vmax.f32 %v930_v60, %v931_v48  ;;  %v969_v5 = vmax.f32 %v967_v16, %v968_v12 }
 0x294   : > { %v933_v2 = vrot.slane %v932_v56, 2  ;;  %v970_v28 = vrot.slane %v969_v5, 2 }
 0x296   : > { %v934_v11 = vmax.f32 %v932_v56, %v933_v2  ;;  %v971_v18 = vmax.f32 %v969_v5, %v970_v28 }
 0x298   : > { %v935_v63 = vrot.slane %v934_v11, 1  ;;  %v972_v7 = vrot.slane %v971_v18, 1 }
 0x29a   : > { %v973_v47 = vmax.f32 %v971_v18, %v972_v7  ;;  %v936_v0 = vmax.f32 %v934_v11, %v935_v63 }
 0x29c   : > { %v976_v52 = vrot.slane %v973_v47, 7 }
 0x29e   : > { %v978_v26 = vsel %vm533_vm4, %v936_v0, %v976_v52 }
 0x29f   : > { %v980_v22 = vmax.f32 %v899_v43, %v978_v26 }
 0x2a1   : > { %v981_v13 = vsub.f32 %v899_v43, %v980_v22  ;;  %1381 = vst.msk [vmem:[#allocation3] sm:$0x3] %vm2149_vm3, %v980_v22  ;;  %v2215_v59 = vperm.slane %v980_v22, 1  ;;  %v2223_v2 = vperm.slane %v980_v22, 0 }
 0x2a3   : > { %v1028_v48 = vsub.f32 %v2137_v8, %v2215_v59  ;;  %v1030_v56 = vsub.f32 %v2167_v19, %v2215_v59  ;;  %v1032_v63 = vsub.f32 %v2188_v44, %v2215_v59  ;;  %v1017_v47 = vsub.f32 %v2081_v53, %v2223_v2 }
 0x2a4   : > { %v1019_v43 = vsub.f32 %v2089_v57, %v2223_v2  ;;  %v1013_v18 = vsub.f32 %v2065_v45, %v2223_v2  ;;  %v1015_v7 = vsub.f32 %v2073_v49, %v2223_v2  ;;  %v982_v23 = vmul.f32 1.442695, %v981_v13 }
 0x2a5   : > { %v1109_v8 = vmul.f32 1.442695, %v1017_v47  ;;  %v1001_v11 = vsub.f32 %v2037_v31, %v2223_v2  ;;  %v1005_v44 = vsub.f32 %v2045_v35, %v2223_v2  ;;  %v1009_v53 = vsub.f32 %v2053_v39, %v2223_v2 }
 0x2a6   : > { %v1113_v19 = vmul.f32 1.442695, %v1019_v43  ;;  %v1101_v22 = vmul.f32 1.442695, %v1013_v18  ;;  %v1011_v57 = vsub.f32 %v2057_v41, %v2223_v2  ;;  %v1105_v45 = vmul.f32 1.442695, %v1015_v7 }
 0x2a7   : > { %1707 = vpow2.f32 %v1109_v8  ;;  %v1026_v49 = vsub.f32 %v2115_v6, %v2215_v59  ;;  %v1077_v3 = vmul.f32 1.442695, %v1001_v11  ;;  %v1007_v31 = vsub.f32 %v2049_v37, %v2223_v2 }
 0x2a8   : > { %1709 = vpow2.f32 %v982_v23  ;;  %v1085_v35 = vmul.f32 1.442695, %v1005_v44  ;;  %v1093_v39 = vmul.f32 1.442695, %v1009_v53  ;;  %v1029_v41 = vsub.f32 %v2165_v14, %v2223_v2 }
 0x2a9   : > { %1711 = vpow2.f32 %v1113_v19  ;;  %v1097_v24 = vmul.f32 1.442695, %v1011_v57  ;;  %v1127_v60 = vmul.f32 1.442695, %v1026_v49  ;;  %v1031_v6 = vsub.f32 %v2186_v4, %v2223_v2 }
 0x2aa   : > { %1713 = vpow2.f32 %v1101_v22  ;;  %v1089_v12 = vmul.f32 1.442695, %v1007_v31  ;;  %v1131_v37 = vmul.f32 1.442695, %v1028_v48  ;;  %v1003_v0 = vsub.f32 %v2041_v33, %v2223_v2 }
 0x2ab   : > { %1715 = vpow2.f32 %v1105_v45  ;;  %v1133_v14 = vmul.f32 1.442695, %v1029_v41  ;;  %v1135_v26 = vmul.f32 1.442695, %v1030_v56  ;;  %v997_v4 = vsub.f32 %v2027_v27, %v2223_v2 }
 0x2ac   : > { %1717 = vpow2.f32 %v1077_v3  ;;  %v1137_v43 = vmul.f32 1.442695, %v1031_v6  ;;  %v1139_v48 = vmul.f32 1.442695, %v1032_v63  ;;  %v999_v56 = vsub.f32 %v2033_v29, %v2223_v2 }
 0x2ad   : > { %v1708_v16 = vpop.eup %1707  ;;  %1719 = vpow2.f32 %v1085_v35  ;;  %v1081_v23 = vmul.f32 1.442695, %v1003_v0  ;;  %v993_v19 = vsub.f32 %v2017_v20, %v2223_v2  ;;  %v1069_v53 = vmul.f32 1.442695, %v997_v4 }
 0x2ae   : > { %v2249_v5 = vpop.eup %1709  ;;  %1721 = vpow2.f32 %v1093_v39  ;;  %v995_v45 = vsub.f32 %v2023_v25, %v2223_v2  ;;  %v1073_v49 = vmul.f32 1.442695, %v999_v56  ;;  %v989_v31 = vsub.f32 %v2007_v10, %v2223_v2 }
 0x2af   : > { %v1712_v28 = vpop.eup %1711  ;;  %1723 = vpow2.f32 %v1097_v24  ;;  %v1224_v7 = vperm.slane %v2249_v5, 0  ;;  %v1225_v33 = vperm.slane %v2249_v5, 1  ;;  %v991_v41 = vsub.f32 %v2013_v15, %v2223_v2 }
 0x2b0   : > { %v1714_v52 = vpop.eup %1713  ;;  %1725 = vpow2.f32 %v1127_v60  ;;  %v1195_v13 = vpack.c.bf16 %v1712_v28, %v1708_v16  ;;  %v1061_v24 = vmul.f32 1.442695, %v993_v19  ;;  %v1018_v60 = vsub.f32 %v2083_v54, %v2215_v59 }
 0x2b1   : > { %v1716_v47 = vpop.eup %1715  ;;  %1727 = vpow2.f32 %v1089_v12  ;;  %v2267_v22 = vmul.f32 0.0, %v1224_v7  ;;  %v2271_v29 = vmul.f32 0.0, %v1225_v33  ;;  %v1065_v16 = vmul.f32 1.442695, %v995_v45 }
 0x2b2   : > { %v2255_v18 = vpop.eup %1717  ;;  %1729 = vpow2.f32 %v1131_v37  ;;  %1265 = vmatpush.bf16.msra.mxu2 %v1195_v13  ;;  %v1193_v27 = vpack.c.bf16 %v1716_v47, %v1714_v52  ;;  %v1020_v10 = vsub.f32 %v2091_v58, %v2215_v59  ;;  %v1010_v28 = vsub.f32 %v2055_v40, %v2215_v59 }
 0x2b3   : > { %v1720_v8 = vpop.eup %1719  ;;  %1731 = vpow2.f32 %v1133_v14  ;;  %v1053_v0 = vmul.f32 1.442695, %v989_v31  ;;  %v1014_v54 = vsub.f32 %v2067_v46, %v2215_v59  ;;  %v1057_v52 = vmul.f32 1.442695, %v991_v41 }
 0x2b4   : > { %v1722_v11 = vpop.eup %1721  ;;  %1733 = vpow2.f32 %v1135_v26  ;;  %v1049_v58 = vsub.f32 %v2182_v34, %v2223_v2  ;;  %v1111_v26 = vmul.f32 1.442695, %v1018_v60  ;;  %v1016_v47 = vsub.f32 %v2075_v50, %v2215_v59 }
 0x2b5   : > { %v1724_v44 = vpop.eup %1723  ;;  %1735 = vpow2.f32 %v1137_v43  ;;  %v1115_v40 = vmul.f32 1.442695, %v1020_v10  ;;  %v1095_v46 = vmul.f32 1.442695, %v1010_v28  ;;  %v1103_v34 = vmul.f32 1.442695, %v1014_v54 }
 0x2b6   : > { %v2263_v63 = vpop.eup %1725  ;;  %1737 = vpow2.f32 %v1139_v48  ;;  %1266 = vmatpush.bf16.msra.mxu2 %v1193_v27  ;;  %v1191_v3 = vpack.c.bf16 %v1724_v44, %v1722_v11  ;;  %v1051_v48 = vsub.f32 %v2204_v62, %v2223_v2  ;;  %v1047_v56 = vsub.f32 %v2157_v9, %v2223_v2  ;;  %v1650_v54 = vld [vmem:[#allocation6] sm:$0xf] }
 0x2b7   : > { %v1728_v57 = vpop.eup %1727  ;;  %1739 = vpow2.f32 %v1081_v23  ;;  %v1173_v50 = vmul.f32 1.442695, %v1049_v58  ;;  %v1107_v11 = vmul.f32 1.442695, %v1016_v47  ;;  %v1006_v44 = vsub.f32 %v2047_v36, %v2215_v59  ;;  %v2523_v58 = vld [vmem:[#allocation12_spill] sm:$0xff] }
 0x2b8   : > { %v2275_v20 = vpop.eup %1729  ;;  %1741 = vpow2.f32 %v1069_v53  ;;  %v1189_v12 = vpack.c.bf16 %v1728_v57, %v1720_v8  ;;  %v1045_v8 = vsub.f32 %v2123_v17, %v2223_v2  ;;  %v1177_v17 = vmul.f32 1.442695, %v1051_v48 }
 0x2b9   : > { %v2277_v21 = vpop.eup %1731  ;;  %v1200_v35 = vpack.c.bf16 %v2275_v20, %v2263_v63  ;;  %1743 = vpow2.f32 %v1073_v49  ;;  %v1041_v19 = vsub.f32 %v2097_v61, %v2223_v2  ;;  %v1043_v57 = vsub.f32 %v2105_v1, %v2223_v2  ;;  %v1410_v63 = vld [vmem:[%s2469_s6 + $0x18] sm:$0xff] }
 0x2ba   : > { %v2283_v39 = vpop.eup %1733  ;;  %1267 = vmatpush.bf16.msra.mxu2 %v1191_v3  ;;  %1745 = vpow2.f32 %v1061_v24  ;;  %v1165_v9 = vmul.f32 1.442695, %v1045_v8  ;;  %v1008_v49 = vsub.f32 %v2051_v38, %v2215_v59  ;;  %v1002_v61 = vsub.f32 %v2039_v32, %v2215_v59 }
 0x2bb   : > { %v2287_v25 = vpop.eup %1735  ;;  %1747 = vpow2.f32 %v1065_v16  ;;  %v1087_v41 = vmul.f32 1.442695, %v1006_v44  ;;  %v1037_v60 = vsub.f32 %v2077_v51, %v2223_v2  ;;  %v1157_v1 = vmul.f32 1.442695, %v1041_v19 }
 0x2bc   : > { %v2291_v6 = vpop.eup %1737  ;;  %v1201_v37 = vpack.c.bf16 %v2287_v25, %v2277_v21  ;;  %1749 = vpow2.f32 %v1053_v0  ;;  %v1039_v38 = vsub.f32 %v2085_v55, %v2223_v2  ;;  %v1161_v10 = vmul.f32 1.442695, %v1043_v57  ;;  %v2524_v55 = vld [vmem:[#allocation15_spill] sm:$0xff]  ;;  %v2527_v57 = vld [vmem:[#allocation10_spill] sm:$0xff]  ;;  %v2542_v21 = vld [vmem:[#allocation16_spill] sm:$0xff] }
 0x2bd   : > { %v1740_v15 = vpop.eup %1739  ;;  %v1202_v14 = vpack.c.bf16 %v2291_v6, %v2283_v39  ;;  %1751 = vpow2.f32 %v1057_v52  ;;  %v1091_v28 = vmul.f32 1.442695, %v1008_v49  ;;  %v1672_v52 = vld [vmem:[#allocation6 + $0x4] sm:$0xf0]  ;;  %v1034_v25 = vsub.f32 %v2542_v21, %v2215_v59  ;;  %v1409_v39 = vld [vmem:[%s2469_s6 + $0x10] sm:$0xff] }
 0x2be   : > { %1268 = vmatpush.bf16.msra.mxu2 %v1189_v12  ;;  %v1742_v13 = vpop.eup %1741  ;;  %v1187_v4 = vpack.c.bf16 %v1740_v15, %v2255_v18  ;;  %1753 = vpow2.f32 %v1111_v26  ;;  %v1012_v18 = vsub.f32 %v2059_v42, %v2215_v59  ;;  %v1169_v42 = vmul.f32 1.442695, %v1047_v56  ;;  %v2522_v15 = vld [vmem:[#allocation14_spill] sm:$0xff]  ;;  %1423 = vperm.xlu2 %1706, %v1409_v39  }
 0x2bf   : > { %v1744_v43 = vpop.eup %1743  ;;  %1755 = vpow2.f32 %v1115_v40  ;;  %v1004_v32 = vsub.f32 %v2522_v15, %v2215_v59  ;;  %v998_v26 = vsub.f32 %v2523_v58, %v2215_v59  ;;  %v2340_v56 = vor.u32 %v1672_v52, %v1650_v54  ;;  %v2532_v52 = vld [vmem:[#allocation9_spill] sm:$0xff] }
 0x2c0   : > { %v1746_v23 = vpop.eup %1745  ;;  %v1185_v62 = vpack.c.bf16 %v1744_v43, %v1742_v13  ;;  %1757 = vpow2.f32 %v1095_v46  ;;  %v1099_v3 = vmul.f32 1.442695, %v1012_v18  ;;  %v1079_v13 = vmul.f32 1.442695, %v1002_v61  ;;  %v2525_v46 = vld [vmem:[#allocation17_spill] sm:$0xff] }
 0x2c1   : > { %v1748_v27 = vpop.eup %1747  ;;  %1759 = vpow2.f32 %v1103_v34  ;;  %v1149_v43 = vmul.f32 1.442695, %v1037_v60  ;;  %v1035_v8 = vsub.f32 %v2525_v46, %v2223_v2  ;;  %v1153_v34 = vmul.f32 1.442695, %v1039_v38 }
 0x2c2   : > { %1269 = vmatpush.bf16.msra.mxu2 %v1187_v4  ;;  %v1750_v53 = vpop.eup %1749  ;;  %1761 = vpow2.f32 %v1173_v50  ;;  %v1183_v36 = vpack.c.bf16 %v1748_v27, %v1746_v23  ;;  %v1033_v4 = vsub.f32 %v2524_v55, %v2223_v2  ;;  %v2526_v23 = vld [vmem:[#allocation13_spill] sm:$0xff]  ;;  %v1071_v44 = vmul.f32 1.442695, %v998_v26 }
 0x2c3   : > { %v1752_v45 = vpop.eup %1751  ;;  %1763 = vpow2.f32 %v1107_v11  ;;  %v1000_v18 = vsub.f32 %v2526_v23, %v2215_v59  ;;  %v1083_v11 = vmul.f32 1.442695, %v1004_v32  ;;  %v2531_v32 = vld [vmem:[#allocation29_spill] sm:$0xff] }
 0x2c4   : > { %v1754_v31 = vpop.eup %1753  ;;  %1765 = vpow2.f32 %v1177_v17  ;;  %v1181_v0 = vpack.c.bf16 %v1752_v45, %v1750_v53  ;;  %v1145_v45 = vmul.f32 1.442695, %v1035_v8  ;;  %v2534_v8 = vld [vmem:[#allocation24_spill] sm:$0xff] }
 0x2c5   : > { %v1756_v24 = vpop.eup %1755  ;;  %1767 = vpow2.f32 %v1165_v9  ;;  %v1141_v9 = vmul.f32 1.442695, %v1033_v4  ;;  %v2533_v4 = vld [vmem:[#allocation21_spill] sm:$0xff] }
 0x2c6   : > { %1270 = vmatpush.bf16.msra.mxu2 %v1185_v62  ;;  %v2328_v16 = vpop.eup %1757  ;;  %1769 = vpow2.f32 %v1169_v42  ;;  %v1196_v47 = vpack.c.bf16 %v1756_v24, %v1754_v31  ;;  %v994_v42 = vsub.f32 %v2527_v57, %v2215_v59  ;;  %v1075_v31 = vmul.f32 1.442695, %v1000_v18  ;;  %v2529_v24 = vld [vmem:[#allocation8_spill] sm:$0xff]  ;;  %v2535_v18 = vld [vmem:[#allocation31_spill] sm:$0xff]  ;;  %1428 = vperm.xlu2 %1706, %v1410_v63  }
 0x2c7   : > { %v1760_v12 = vpop.eup %1759  ;;  %1771 = vpow2.f32 %v1099_v3  ;;  %v2528_v3 = vld [vmem:[#allocation11_spill] sm:$0xff]  ;;  %v990_v60 = vsub.f32 %v2529_v24, %v2215_v59 }
 0x2c8   : > { %v1762_v51 = vpop.eup %1761  ;;  %1773 = vpow2.f32 %v1087_v41 }
 0x2c9   : > { %v1764_v40 = vpop.eup %1763  ;;  %1775 = vpow2.f32 %v1157_v1 }
 0x2ca   : > { %1271 = vmatpush.bf16.msra.mxu2 %v1183_v36  ;;  %v1766_v48 = vpop.eup %1765  ;;  %1777 = vpow2.f32 %v1161_v10  ;;  %v1194_v17 = vpack.c.bf16 %v1764_v40, %v1760_v12  ;;  %v996_v36 = vsub.f32 %v2528_v3, %v2215_v59  ;;  %v2530_v10 = vld [vmem:[#allocation27_spill] sm:$0xff]  ;;  %v2537_v3 = vld [vmem:[#allocation30_spill] sm:$0xff] }
 0x2cb   : > { %v1768_v50 = vpop.eup %1767  ;;  %1779 = vpow2.f32 %v1091_v28  ;;  %v1211_v62 = vpack.c.bf16 %v1766_v48, %v1762_v51  ;;  %v1025_v12 = vsub.f32 %v2530_v10, %v2223_v2  ;;  %v1027_v28 = vsub.f32 %v2531_v32, %v2223_v2  ;;  %v2539_v32 = vld [vmem:[#allocation26_spill] sm:$0xff] }
 0x2cc   : > { %v1770_v27 = vpop.eup %1769  ;;  %1781 = vpow2.f32 %v1079_v13  ;;  %v992_v51 = vsub.f32 %v2532_v52, %v2215_v59  ;;  %v1067_v58 = vmul.f32 1.442695, %v996_v36  ;;  %v1052_v13 = vsub.f32 %v2206_v30, %v2215_v59 }
 0x2cd   : > { %v1772_v19 = vpop.eup %1771  ;;  %1783 = vpow2.f32 %v1149_v43  ;;  %1288 = vmatpush.bf16.msra.mxu3 %v1211_v62  ;;  %v1209_v61 = vpack.c.bf16 %v1770_v27, %v1768_v50  ;;  %v1021_v43 = vsub.f32 %v2533_v4, %v2223_v2  ;;  %v1125_v48 = vmul.f32 1.442695, %v1025_v12  ;;  %v1658_v27 = vld [vmem:[#allocation6 + $0x10] sm:$0xf] }
 0x2ce   : > { %1272 = vmatpush.bf16.msra.mxu2 %v1181_v0  ;;  %v1774_v53 = vpop.eup %1773  ;;  %1785 = vpow2.f32 %v1153_v34  ;;  %v1192_v1 = vpack.c.bf16 %v1772_v19, %v2328_v16  ;;  %v1063_v0 = vmul.f32 1.442695, %v994_v42  ;;  %v1023_v34 = vsub.f32 %v2534_v8, %v2223_v2  ;;  %v2536_v2 = vld [vmem:[#allocation28_spill] sm:$0xff] }
 0x2cf   : > { %v1776_v49 = vpop.eup %1775  ;;  %1787 = vpow2.f32 %v1083_v11  ;;  %v1129_v50 = vmul.f32 1.442695, %v1027_v28  ;;  %v1050_v11 = vsub.f32 %v2535_v18, %v2215_v59  ;;  %v1059_v30 = vmul.f32 1.442695, %v992_v51 }
 0x2d0   : > { %v1778_v41 = vpop.eup %1777  ;;  %1789 = vpow2.f32 %v1071_v44  ;;  %v1674_v44 = vld [vmem:[#allocation6 + $0x14] sm:$0xf0]  ;;  %v1179_v19 = vmul.f32 1.442695, %v1052_v13  ;;  %v1117_v57 = vmul.f32 1.442695, %v1021_v43  ;;  %v1046_v42 = vsub.f32 %v2536_v2, %v2215_v59 }
 0x2d1   : > { %1273 = vmatmul.bf16.vlgmr.msra.gmra.mxu2 %v2340_v56  ;;  %v1780_v38 = vpop.eup %1779  ;;  %1791 = vpow2.f32 %v1141_v9  ;;  %1289 = vmatpush.bf16.msra.mxu3 %v1209_v61  ;;  %v1207_v16 = vpack.c.bf16 %v1778_v41, %v1776_v49  ;;  %v2368_v49 = vor.u32 %v1674_v44, %v1658_v27  ;;  %v1048_v36 = vsub.f32 %v2537_v3, %v2215_v59 }
 0x2d2   : > { %1311 = vmatpush.bf16.msrb.mxu2 %v1196_v47  ;;  %v1782_v15 = vpop.eup %1781  ;;  %1793 = vpow2.f32 %v1145_v45  ;;  %v1055_v47 = vmul.f32 1.442695, %v990_v60  ;;  %v1190_v40 = vpack.c.bf16 %v1780_v38, %v1774_v53  ;;  %v1121_v45 = vmul.f32 1.442695, %v1023_v34  ;;  %v2538_v38 = vld [vmem:[#allocation23_spill] sm:$0xff] }
 0x2d3   : > { %v1784_v54 = vpop.eup %1783  ;;  %1795 = vpow2.f32 %v1075_v31  ;;  %v1175_v31 = vmul.f32 1.442695, %v1050_v11  ;;  %v1042_v10 = vsub.f32 %v2538_v38, %v2215_v59  ;;  %v1167_v12 = vmul.f32 1.442695, %v1046_v42 }
 0x2d4   : > { %v1786_v26 = vpop.eup %1785  ;;  %1797 = vpow2.f32 %v1063_v0  ;;  %v1044_v28 = vsub.f32 %v2539_v32, %v2215_v59  ;;  %v1171_v0 = vmul.f32 1.442695, %v1048_v36 }
 0x2d5   : > { %v1788_v55 = vpop.eup %1787  ;;  %1290 = vmatpush.bf16.msra.mxu3 %v1207_v16  ;;  %1799 = vpow2.f32 %v1067_v58  ;;  %v1205_v62 = vpack.c.bf16 %v1786_v26, %v1784_v54  ;;  %v2540_v16 = vld [vmem:[#allocation19_spill] sm:$0xff]  ;;  %v1159_v13 = vmul.f32 1.442695, %v1042_v10 }
 0x2d6   : > { %1312 = vmatpush.bf16.msrb.mxu2 %v1194_v17  ;;  %v1790_v46 = vpop.eup %1789  ;;  %1801 = vpow2.f32 %v1055_v47  ;;  %v1188_v9 = vpack.c.bf16 %v1788_v55, %v1782_v15  ;;  %v1038_v26 = vsub.f32 %v2540_v16, %v2215_v59  ;;  %v1163_v4 = vmul.f32 1.442695, %v1044_v28  ;;  %v1673_v28 = vld [vmem:[#allocation6 + $0x14] sm:$0xf] }
 0x2d7   : > { %v1792_v23 = vpop.eup %1791  ;;  %1803 = vpow2.f32 %v1125_v48 }
 0x2d8   : > { %v1794_v17 = vpop.eup %1793  ;;  %1805 = vpow2.f32 %v1129_v50  ;;  %v1151_v50 = vmul.f32 1.442695, %v1038_v26 }
 0x2d9   : > { %v1796_v53 = vpop.eup %1795  ;;  %1291 = vmatpush.bf16.msra.mxu3 %v1205_v62  ;;  %1807 = vpow2.f32 %v1059_v30  ;;  %v1203_v61 = vpack.c.bf16 %v1794_v17, %v1792_v23  ;;  %v631_v23 = vld [vmem:[#allocation6 + $0x20] sm:$0x11]  ;;  %v1652_v62 = vld [vmem:[#allocation6 + $0x8] sm:$0xf0] }
 0x2da   : > { %1313 = vmatpush.bf16.msrb.mxu2 %v1192_v1  ;;  %v1798_v41 = vpop.eup %1797  ;;  %1809 = vpow2.f32 %v1179_v19  ;;  %v1186_v24 = vpack.c.bf16 %v1796_v53, %v1790_v46  ;;  %v1671_v30 = vld [vmem:[#allocation6 + $0x4] sm:$0xf]  ;;  %v1251_v27 = vunpack.c.l.b16 %v631_v23  ;;  %v1143_v53 = vmul.f32 1.442695, %v1034_v25 }
 0x2db   : > { %v1800_v60 = vpop.eup %1799  ;;  %1811 = vpow2.f32 %v1117_v57  ;;  %v1655_v57 = vor.u32 %v1671_v30, %v1652_v62  ;;  %v1252_v26 = vunpack.c.h.b16 %v631_v23 }
 0x2dc   : > { %v1802_v1 = vpop.eup %1801  ;;  %1813 = vpow2.f32 %v1121_v45  ;;  %v1184_v52 = vpack.c.bf16 %v1800_v60, %v1798_v41  ;;  %v2544_v41 = vld [vmem:[#allocation22_spill] sm:$0xff]  ;;  %v2545_v60 = vld [vmem:[#allocation25_spill] sm:$0xff] }
 0x2dd   : > { %1292 = vmatpush.bf16.msra.mxu3 %v1203_v61  ;;  %v1804_v15 = vpop.eup %1803  ;;  %1815 = vpow2.f32 %v1175_v31 }
 0x2de   : > { %1314 = vmatpush.bf16.msrb.mxu2 %v1190_v40  ;;  %v1806_v54 = vpop.eup %1805  ;;  %1817 = vpow2.f32 %v1167_v12  ;;  %v2541_v40 = vld [vmem:[#allocation20_spill] sm:$0xff] }
 0x2df   : > { %v1808_v51 = vpop.eup %1807  ;;  %v1040_v55 = vsub.f32 %v2541_v40, %v2215_v59  ;;  %1819 = vpow2.f32 %v1171_v0  ;;  %v1199_v43 = vpack.c.bf16 %v1806_v54, %v1804_v15  ;;  %v1660_v0 = vld [vmem:[#allocation6 + $0x18] sm:$0xf0] }
 0x2e0   : > { %v1810_v58 = vpop.eup %1809  ;;  %v1182_v46 = vpack.c.bf16 %v1808_v51, %v1802_v1  ;;  %1821 = vpow2.f32 %v1159_v13  ;;  %v1024_v1 = vsub.f32 %v2545_v60, %v2215_v59  ;;  %v1258_v13 = vpack.c.b16 %v1252_v26, %v1252_v26 }
 0x2e1   : > { %1278 = vmatmul.bf16.gmra.mxu2 %v2368_v49  ;;  %1293 = vmatpush.bf16.msra.mxu3 %v1201_v37  ;;  %v1812_v47 = vpop.eup %1811  ;;  %v2543_v37 = vld [vmem:[#allocation18_spill] sm:$0xff]  ;;  %v1155_v18 = vmul.f32 1.442695, %v1040_v55  ;;  %1823 = vpow2.f32 %v1163_v4 }
 0x2e2   : > { %1315 = vmatpush.bf16.msrb.mxu2 %v1188_v9  ;;  %v1814_v48 = vpop.eup %1813  ;;  %v1036_v34 = vsub.f32 %v2543_v37, %v2215_v59  ;;  %v1257_v9 = vpack.c.b16 %v1251_v27, %v1251_v27  ;;  %1825 = vpow2.f32 %v1151_v50  ;;  %v1123_v32 = vmul.f32 1.442695, %v1024_v1 }
 0x2e3   : > { %v1816_v8 = vpop.eup %1815  ;;  %v1197_v11 = vpack.c.bf16 %v1814_v48, %v1812_v47  ;;  %1827 = vpow2.f32 %v1155_v18 }
 0x2e4   : > { %v1818_v44 = vpop.eup %1817  ;;  %v1212_v17 = vpack.c.bf16 %v1810_v58, %v1816_v8  ;;  %v1147_v2 = vmul.f32 1.442695, %v1036_v34  ;;  %1829 = vpow2.f32 %v1143_v53 }
 0x2e5   : > { %1294 = vmatpush.bf16.msra.mxu3 %v1199_v43  ;;  %v1820_v19 = vpop.eup %1819 }
 0x2e6   : > { %1316 = vmatpush.bf16.msrb.mxu2 %v1186_v24  ;;  %v1822_v42 = vpop.eup %1821  ;;  %v1210_v45 = vpack.c.bf16 %v1820_v19, %v1818_v44  ;;  %1831 = vpow2.f32 %v1147_v2  ;;  %v1022_v24 = vsub.f32 %v2544_v41, %v2215_v59  ;;  %v1407_v59 = vld [vmem:[%s2469_s6] sm:$0xff] }
 0x2e7   : > { %v1824_v3 = vpop.eup %1823  ;;  %1413 = vperm.xlu1 %1705, %v1407_v59  }
 0x2e8   : > { %v1826_v36 = vpop.eup %1825  ;;  %v1208_v31 = vpack.c.bf16 %v1824_v3, %v1822_v42  ;;  %v1119_v15 = vmul.f32 1.442695, %v1022_v24 }
 0x2e9   : > { %1295 = vmatpush.bf16.msra.mxu3 %v1197_v11  ;;  %v1828_v61 = vpop.eup %1827  ;;  %v1221_v11 = vld [vmem:[#allocation4 + $0x40] sm:$0x1] }
 0x2ea   : > { %1317 = vmatpush.bf16.msrb.mxu2 %v1184_v52  ;;  %v1830_v38 = vpop.eup %1829  ;;  %v1206_v10 = vpack.c.bf16 %v1828_v61, %v1826_v36  ;;  %1833 = vpow2.f32 %v1119_v15  ;;  %v1663_v52 = vor.u32 %v1673_v28, %v1660_v0  ;;  %v1236_v62 = vmul.f32 %v1224_v7, %v1221_v11  ;;  %v1453_v0 = vld [vmem:[%s1943_s15 + $0x20] sm:$0xff] }
 0x2eb   : > { %1835 = vpow2.f32 %v1123_v32 }
 0x2ec   : > { %1296 = vmatmul.bf16.vlgmr.msra.gmra.mxu3 %v1655_v57  ;;  %v1832_v12 = vpop.eup %1831 }
 0x2ed   : > { %1334 = vmatpush.bf16.msrb.mxu3 %v1212_v17  ;;  %v1204_v54 = vpack.c.bf16 %v1832_v12, %v1830_v38  ;;  %v1440_v38 = vstv %s1439_s17 }
 0x2ee   : > { %1318 = vmatpush.bf16.msrb.mxu2 %v1182_v46 }
 0x2f0   : > { %v1834_v51 = vpop.eup %1833 }
 0x2f1   : > { %1283 = vmatmul.bf16.gmra.mxu2 %v1257_v9  ;;  %1335 = vmatpush.bf16.msrb.mxu3 %v1210_v45  ;;  %v1836_v58 = vpop.eup %1835 }
 0x2f2   : > { %v1198_v16 = vpack.c.bf16 %v1836_v58, %v1834_v51 }
 0x2f5   : > { %1336 = vmatpush.bf16.msrb.mxu3 %v1208_v31 }
 0x2f9   : > { %1337 = vmatpush.bf16.msrb.mxu3 %v1206_v10 }
 0x2fc   : > { %1301 = vmatmul.bf16.gmra.mxu3 %v1663_v52 }
 0x2fd   : > { %1338 = vmatpush.bf16.msrb.mxu3 %v1204_v54  ;;  %v1449_v54 = vld [vmem:[%s1943_s15] sm:$0xff] }
 0x301   : > { %1319 = vmatmul.bf16.vlgmr.msrb.gmra.mxu2 %v2340_v56  ;;  %1339 = vmatpush.bf16.msrb.mxu3 %v1202_v14  ;;  %v1408_v56 = vld [vmem:[%s2469_s6 + $0x8] sm:$0xff] }
 0x302   : > { %1418 = vperm.xlu1 %1705, %v1408_v56  }
 0x305   : > { %1340 = vmatpush.bf16.msrb.mxu3 %v1200_v35 }
 0x309   : > { %1341 = vmatpush.bf16.msrb.mxu3 %v1198_v16 }
 0x30c   : > { %1306 = vmatmul.bf16.gmra.mxu3 %v1258_v13 }
 0x311   : > { %1324 = vmatmul.bf16.gmra.mxu2 %v2368_v49 }
 0x31c   : > { %1342 = vmatmul.bf16.vlgmr.msrb.gmra.mxu3 %v1655_v57 }
 0x321   : > { %1329 = vmatmul.bf16.gmra.mxu2 %v1257_v9  ;;  %v2418_v9 = vpop.permute.xlu2 %1423 }
 0x329   : > { %v1429_v31 = vpop.permute.xlu2 %1428 }
 0x32c   : > { %1347 = vmatmul.bf16.gmra.mxu3 %v1663_v52  ;;  %v1455_v52 = vld [vmem:[%s1943_s15 + $0x30] sm:$0xff] }
 0x33c   : > { %1352 = vmatmul.bf16.gmra.mxu3 %v1258_v13  ;;  %v1451_v13 = vld [vmem:[%s1943_s15 + $0x10] sm:$0xff] }
 0x354   : > { %v1274_v20 = vpop.f32.mrf.mxu2 }
 0x359   : > { %v2420_v53 = vpop.permute.xlu1 %1413 }
 0x35c   : > { %v1276_v35 = vpop.f32.mrf.mxu2 }
 0x364   : > { %v1279_v6 = vpop.f32.mrf.mxu2 }
 0x36c   : > { %v1281_v14 = vpop.f32.mrf.mxu2 }
 0x36f   : > { %v1297_v49 = vpop.f32.mrf.mxu3 }
 0x370   : > { %v1298_v40 = vadd.f32 %v1297_v49, %v1274_v20 }
 0x372   : > { %v1357_v55 = vadd.f32 %v1298_v40, %v2267_v22 }
 0x374   : > { %v1284_v47 = vpop.f32.mrf.mxu2  ;;  %v1419_v61 = vpop.permute.xlu1 %1418 }
 0x377   : > { %v1299_v4 = vpop.f32.mrf.mxu3 }
 0x378   : > { %v1300_v48 = vadd.f32 %v1299_v4, %v1276_v35 }
 0x37a   : > { %v1359_v46 = vadd.f32 %v1300_v48, %v2267_v22 }
 0x37c   : > { %v1286_v43 = vpop.f32.mrf.mxu2 }
 0x37d   : > { %v1222_v43 = vld [vmem:[#allocation4 + $0x38] sm:$0x1] }
 0x37f   : > { %v1302_v8 = vpop.f32.mrf.mxu3 }
 0x380   : > { %v1303_v21 = vadd.f32 %v1302_v8, %v1279_v6 }
 0x382   : > { %v1361_v37 = vadd.f32 %v1303_v21, %v2267_v22 }
 0x384   : > { %v1320_v25 = vpop.f32.mrf.mxu2 }
 0x387   : > { %v1304_v34 = vpop.f32.mrf.mxu3 }
 0x388   : > { %v1305_v50 = vadd.f32 %v1304_v34, %v1281_v14 }
 0x38a   : > { %v1363_v23 = vadd.f32 %v1305_v50, %v2267_v22 }
 0x38c   : > { %v1322_v18 = vpop.f32.mrf.mxu2 }
 0x38f   : > { %v1307_v30 = vpop.f32.mrf.mxu3 }
 0x390   : > { %v1308_v27 = vadd.f32 %v1307_v30, %v1284_v47 }
 0x392   : > { %v1365_v44 = vadd.f32 %v1308_v27, %v1236_v62  ;;  %v1450_v27 = vld [vmem:[%s1943_s15 + $0x8] sm:$0xff] }
 0x394   : > { %v1325_v17 = vpop.f32.mrf.mxu2  ;;  %1375 = vst [vmem:[#allocation4 + $0x40] sm:$0x1] %v1365_v44  ;;  %v1452_v44 = vld [vmem:[%s1943_s15 + $0x18] sm:$0xff] }
 0x397   : > { %v1309_v19 = vpop.f32.mrf.mxu3 }
 0x39b   : > { %v1393_v2 = vld [vmem:[#allocation4 + $0x40] sm:$0x1] }
 0x39c   : > { %v1327_v57 = vpop.f32.mrf.mxu2  ;;  %1837 = vrcp.f32 %v1393_v2 }
 0x39f   : > { %v1343_v22 = vpop.f32.mrf.mxu3 }
 0x3a0   : > { %v1344_v42 = vadd.f32 %v1343_v22, %v1320_v25 }
 0x3a2   : > { %v1838_v45 = vpop.eup %1837  ;;  %v1358_v3 = vadd.f32 %v1344_v42, %v2271_v29  ;;  %v1456_v42 = vld [vmem:[%s1943_s15 + $0x38] sm:$0xff] }
 0x3a3   : > { %v1397_v36 = vperm.slane %v1838_v45, 0 }
 0x3a4   : > { %v1330_v7 = vpop.f32.mrf.mxu2 }
 0x3a5   : > { %v1403_v41 = vmul.f32 %v1397_v36, %v1361_v37  ;;  %v1399_v24 = vmul.f32 %v1397_v36, %v1357_v55  ;;  %v1405_v60 = vmul.f32 %v1397_v36, %v1363_v23  ;;  %v1401_v1 = vmul.f32 %v1397_v36, %v1359_v46 }
 0x3a6   : > { %v1237_v46 = vmul.f32 %v1225_v33, %v1222_v43 }
 0x3a7   : > { %v1435_v10 = vadd.f32 %v2418_v9, %v1403_v41  ;;  %v1431_v12 = vadd.f32 %v2420_v53, %v1399_v24  ;;  %v1437_v15 = vadd.f32 %v1429_v31, %v1405_v60  ;;  %v1433_v32 = vadd.f32 %v1419_v61, %v1401_v1  ;;  %v1345_v28 = vpop.f32.mrf.mxu3 }
 0x3a8   : > { %v1346_v59 = vadd.f32 %v1345_v28, %v1322_v18 }
 0x3a9   : > { %v1445_v51 = vmul.f32 %v1440_v38, %v1435_v10  ;;  %v1441_v58 = vmul.f32 %v1440_v38, %v1431_v12  ;;  %v1447_v16 = vmul.f32 %v1440_v38, %v1437_v15  ;;  %v1443_v26 = vmul.f32 %v1440_v38, %v1433_v32 }
 0x3aa   : > { %v1360_v56 = vadd.f32 %v1346_v59, %v2271_v29 }
 0x3ab   : > { %v1461_v63 = vadd.f32 %v1453_v0, %v1445_v51  ;;  %v1457_v20 = vadd.f32 %v1449_v54, %v1441_v58  ;;  %v1463_v35 = vadd.f32 %v1455_v52, %v1447_v16  ;;  %v1459_v6 = vadd.f32 %v1451_v13, %v1443_v26 }
 0x3ac   : > { %v1332_v39 = vpop.f32.mrf.mxu2 }
 0x3ad   : > { %1469 = vst [vmem:[%s2433_s20 + $0x20] sm:$0xff] %v1461_v63 }
 0x3ae   : > { %1465 = vst [vmem:[%s2433_s20] sm:$0xff] %v1457_v20 }
 0x3af   : > { %1471 = vst [vmem:[%s2433_s20 + $0x30] sm:$0xff] %v1463_v35  ;;  %v1348_v14 = vpop.f32.mrf.mxu3 }
 0x3b0   : > { %1467 = vst [vmem:[%s2433_s20 + $0x10] sm:$0xff] %v1459_v6  ;;  %v1349_v49 = vadd.f32 %v1348_v14, %v1325_v17  ;;  %v1454_v17 = vld [vmem:[%s1943_s15 + $0x28] sm:$0xff] }
 0x3b2   : > { %v1362_v47 = vadd.f32 %v1349_v49, %v2271_v29 }
 0x3b7   : > { %v1350_v40 = vpop.f32.mrf.mxu3 }
 0x3b8   : > { %v1351_v55 = vadd.f32 %v1350_v40, %v1327_v57 }
 0x3ba   : > { %v1364_v4 = vadd.f32 %v1351_v55, %v2271_v29 }
 0x3bf   : > { %v1353_v48 = vpop.f32.mrf.mxu3 }
 0x3c0   : > { %v1354_v8 = vadd.f32 %v1353_v48, %v1330_v7 }
 0x3c2   : > { %v1366_v21 = vadd.f32 %v1354_v8, %v1237_v46 }
 0x3c4   : > { %1376 = vst [vmem:[#allocation4 + $0x38] sm:$0x1] %v1366_v21 }
 0x3c7   : > { %v1355_v25 = vpop.f32.mrf.mxu3 }
 0x3cb   : > { %v1394_v37 = vld [vmem:[#allocation4 + $0x38] sm:$0x1] }
 0x3cc   : > { %1839 = vrcp.f32 %v1394_v37 }
 0x3d2   : > { %v1840_v34 = vpop.eup %1839 }
 0x3d3   : > { %v1398_v50 = vperm.slane %v1840_v34, 0 }
 0x3d5   : > { %v1400_v23 = vmul.f32 %v1398_v50, %v1358_v3  ;;  %v1402_v18 = vmul.f32 %v1398_v50, %v1360_v56  ;;  %v1404_v29 = vmul.f32 %v1398_v50, %v1362_v47  ;;  %v1406_v11 = vmul.f32 %v1398_v50, %v1364_v4 }
 0x3d7   : > { %v1432_v30 = vadd.f32 %v2420_v53, %v1400_v23  ;;  %v1434_v5 = vadd.f32 %v1419_v61, %v1402_v18  ;;  %v1436_v33 = vadd.f32 %v2418_v9, %v1404_v29  ;;  %v1438_v62 = vadd.f32 %v1429_v31, %v1406_v11 }
 0x3d9   : > { %v1442_v19 = vmul.f32 %v1440_v38, %v1432_v30  ;;  %v1444_v57 = vmul.f32 %v1440_v38, %v1434_v5  ;;  %v1446_v2 = vmul.f32 %v1440_v38, %v1436_v33  ;;  %v1448_v22 = vmul.f32 %v1440_v38, %v1438_v62 }
 0x3db   : > { %v1458_v45 = vadd.f32 %v1450_v27, %v1442_v19  ;;  %v1460_v3 = vadd.f32 %v1452_v44, %v1444_v57  ;;  %v1462_v7 = vadd.f32 %v1454_v17, %v1446_v2  ;;  %v1464_v53 = vadd.f32 %v1456_v42, %v1448_v22 }
 0x3dd   : > { %1466 = vst [vmem:[%s2433_s20 + $0x8] sm:$0xff] %v1458_v45 }
 0x3de   : > { %1468 = vst [vmem:[%s2433_s20 + $0x18] sm:$0xff] %v1460_v3 }
 0x3df   : > { %1470 = vst [vmem:[%s2433_s20 + $0x28] sm:$0xff] %v1462_v7 }
 0x3e0   : > { %1472 = vst [vmem:[%s2433_s20 + $0x38] sm:$0xff] %v1464_v53 }
 0x3e1 PF: > { %s19_s9 = sadd.s32 1, %s1863_s9   ;;  %s2546_s29 = smov %s1859_s30 }
 0x3e2   : > { %p16_p5 = scmp.ge.s32.totalorder %s19_s9, 4   ;;  %s2547_s30 = smov %s2549_s7 }
 0x3e4   :  { %18 = sbr.rel (!%p16_p5) target bundleno = 2 (0x2), region = 101 }

</bundles_post_ra>
